<compile_context>
chip_gen: v6e
topology: v6e:2x2x1
jax: 0.10.0
libtpu: 0.0.40
codegen_flags: <defaults>
</compile_context>

<pallas_src>
import functools

import numpy as np

import jax
import jax.numpy as jnp
from jax.experimental import pallas as pl
from jax.experimental.pallas import tpu as pltpu

_MIB = 1024 * 1024


def _rup(x, m):
    return ((x + m - 1) // m) * m


def _tpu_gen():
    try:
        kind = jax.devices()[0].device_kind.lower()
    except Exception:
        return "default"
    if "v6" in kind:
        return "v6e"
    if "v5 lite" in kind or "v5e" in kind or "v5lite" in kind:
        return "v5e"
    if "v7" in kind or "tpu7" in kind:
        return "v7x"
    return "default"


_CFG_TABLE = {
    "v5e":     dict(w_cap=6 * _MIB,  tc_max=128, min_steps=1, vmem=48 * _MIB),
    "v6e":     dict(w_cap=12 * _MIB, tc_max=256, min_steps=1, vmem=64 * _MIB),
    "v7x":     dict(w_cap=8 * _MIB,  tc_max=256, min_steps=2, vmem=40 * _MIB),
    "default": dict(w_cap=6 * _MIB,  tc_max=128, min_steps=1, vmem=48 * _MIB),
}
_GEN = _tpu_gen()
_CFG = _CFG_TABLE[_GEN]


# ----------------------------------------------------------------------------
# Parameter container: arrays are traced pytree leaves, conv geometry is static
# ----------------------------------------------------------------------------
@jax.tree_util.register_pytree_node_class
class ConvParam:
    """Conv2d(bias=False) + folded BN: w2d=(kh*kw*Cin, Cout_p) bf16, b=(1, Cout_p) f32."""

    def __init__(self, w2d, b, k, p, d, cout):
        self.w2d = w2d
        self.b = b
        self.k = k          # (kh, kw)
        self.p = p          # (ph, pw)
        self.d = d          # (dh, dw)
        self.cout = cout    # true (unpadded) output channels

    def tree_flatten(self):
        return (self.w2d, self.b), (self.k, self.p, self.d, self.cout)

    @classmethod
    def tree_unflatten(cls, aux, children):
        w2d, b = children
        k, p, d, cout = aux
        return cls(w2d, b, k, p, d, cout)


# ----------------------------------------------------------------------------
# Small glue helpers
# ----------------------------------------------------------------------------
def _fit_rows(a2d, rows):
    r = a2d.shape[0]
    if r < rows:
        return jnp.pad(a2d, ((0, rows - r), (0, 0)))
    if r > rows:
        return a2d[:rows]
    return a2d


@functools.lru_cache(maxsize=None)
def _image_mask_np(n, h, w, pad, rows):
    """1.0 at image positions of the flattened padded grid, 0 elsewhere."""
    hg, wg = h + 2 * pad, w + 2 * pad
    m = np.zeros((rows, 1), np.float32)
    for im in range(n):
        base = im * hg * wg
        for i in range(h):
            s = base + (pad + i) * wg + pad
            m[s:s + w] = 1.0
    return m


# ----------------------------------------------------------------------------
# Cout tile selection (per TPU generation)
# ----------------------------------------------------------------------------
def _pick_tile_cout(cout_p, rows_kcin, is_1x1):
    cap = (2 * _MIB) if is_1x1 else _CFG["w_cap"]
    tc_max = cout_p if is_1x1 else min(_CFG["tc_max"], cout_p)
    divs = [d for d in range(128, cout_p + 1, 128)
            if cout_p % d == 0 and d <= tc_max]
    if not divs:
        divs = [cout_p]
    fitting = [d for d in divs if rows_kcin * d * 2 <= cap]
    tc = max(fitting) if fitting else min(divs)
    if _CFG["min_steps"] > 1:
        splits = [d for d in divs if cout_p // d >= _CFG["min_steps"] and d <= tc]
        if splits:
            tc = max(splits)
    return tc


# ----------------------------------------------------------------------------
# Single-conv Pallas kernel: all taps accumulated in one invocation
# ----------------------------------------------------------------------------
def _conv_kernel(x_ref, w_ref, b_ref, *rest, offsets, m, cin, relu, has_res):
    if has_res:
        r_ref, o_ref = rest
    else:
        (o_ref,) = rest

    acc = None
    for t, off in enumerate(offsets):                 # static unrolled tap loop
        part = jnp.dot(x_ref[off:off + m, :],
                       w_ref[t * cin:(t + 1) * cin, :],
                       preferred_element_type=jnp.float32)
        acc = part if acc is None else acc + part

    y = acc + b_ref[...]                              # folded-BN bias (f32)
    if has_res:
        y = y + r_ref[...].astype(jnp.float32)        # fused residual add
    if relu:
        y = jnp.maximum(y, 0.0)
    o_ref[...] = y.astype(o_ref.dtype)


@functools.lru_cache(maxsize=None)
def _conv_call(offsets, m, mx, cin, cout_p, relu, has_res):
    k = len(offsets)
    tc = _pick_tile_cout(cout_p, k * cin, is_1x1=(k == 1))
    n_ct = cout_p // tc
    kernel = functools.partial(_conv_kernel, offsets=offsets, m=m, cin=cin,
                               relu=relu, has_res=has_res)
    in_specs = [
        pl.BlockSpec((mx, cin), lambda j: (0, 0)),      # padded input (resident)
        pl.BlockSpec((k * cin, tc), lambda j: (0, j)),  # weights, Cout-tiled
        pl.BlockSpec((1, tc), lambda j: (0, j)),        # folded-BN bias
    ]
    if has_res:
        in_specs.append(pl.BlockSpec((m, tc), lambda j: (0, j)))  # residual

    return pl.pallas_call(
        kernel,
        out_shape=jax.ShapeDtypeStruct((m, cout_p), jnp.bfloat16),
        grid_spec=pltpu.PrefetchScalarGridSpec(
            num_scalar_prefetch=0,
            grid=(n_ct,),
            in_specs=in_specs,
            out_specs=pl.BlockSpec((m, tc), lambda j: (0, j)),
        ),
        compiler_params=pltpu.CompilerParams(
            dimension_semantics=("parallel",),
            vmem_limit_bytes=_CFG["vmem"],
        ),
    )


def conv_bn(x, cp, *, relu=False, residual=None):
    """Conv2d(bias=False)+folded BN (+ReLU) (+fused residual add).  x: NHWC, stride 1."""
    kh, kw = cp.k
    ph, pw = cp.p
    dh, dw = cp.d
    n, h, w, cin = x.shape
    cout_p = cp.w2d.shape[1]

    hg, wg = h + 2 * ph, w + 2 * pw
    hout = h + 2 * ph - dh * (kh - 1)
    wout = w + 2 * pw - dw * (kw - 1)
    assert hout > 0 and wout > 0

    # only compute the rows that survive the crop (rounded to 16 for bf16 stores)
    m_c = _rup((n - 1) * hg * wg + (hout - 1) * wg + wout, 16)
    max_off = dh * (kh - 1) * wg + dw * (kw - 1)
    mx = _rup(m_c + max_off, 16)
    assert max_off + m_c <= mx

    xp = jnp.pad(x.astype(jnp.bfloat16),
                 ((0, 0), (ph, ph), (pw, pw), (0, 0))).reshape(n * hg * wg, cin)
    xf = _fit_rows(xp, mx)
    offsets = tuple(i * dh * wg + j * dw for i in range(kh) for j in range(kw))

    args = [xf, cp.w2d, cp.b]
    if residual is not None:
        r = jnp.pad(residual.astype(jnp.bfloat16),
                    ((0, 0), (0, hg - residual.shape[1]),
                     (0, wg - residual.shape[2]),
                     (0, cout_p - residual.shape[3])))
        args.append(_fit_rows(r.reshape(n * hg * wg, cout_p), m_c))

    out = _conv_call(offsets, m_c, mx, cin, cout_p, bool(relu),
                     residual is not None)(*args)
    out = _fit_rows(out, n * hg * wg).reshape(n, hg, wg, cout_p)
    return out[:, :hout, :wout, :cp.cout]


# ----------------------------------------------------------------------------
# Fused RFB branch chain:  (1xk) -> (kx1) -> (3x3 dilated)  in ONE pallas_call.
# Intermediates stay in VMEM scratch on a common padded grid (pad = dilation of
# the last conv); after each stage the result is re-anchored at the image block
# and multiplied by a 0/1 mask so the padding stays exactly zero.
# ----------------------------------------------------------------------------
def _chain_kernel(mask_ref, x_ref, wa_ref, ba_ref, wb_ref, bb_ref, wc_ref, bc_ref,
                  o_ref, bufA, bufB, *, offs_a, offs_b, offs_c, base_img, L, C):
    msk = mask_ref[base_img:base_img + L, :]

    # stage A: 1xk conv
    bufA[...] = jnp.zeros_like(bufA)
    acc = None
    for t, off in enumerate(offs_a):
        p = jnp.dot(x_ref[off:off + L, :], wa_ref[t * C:(t + 1) * C, :],
                    preferred_element_type=jnp.float32)
        acc = p if acc is None else acc + p
    acc = (acc + ba_ref[...]) * msk
    bufA[base_img:base_img + L, :] = acc.astype(jnp.bfloat16)

    # stage B: kx1 conv
    bufB[...] = jnp.zeros_like(bufB)
    acc = None
    for t, off in enumerate(offs_b):
        p = jnp.dot(bufA[off:off + L, :], wb_ref[t * C:(t + 1) * C, :],
                    preferred_element_type=jnp.float32)
        acc = p if acc is None else acc + p
    acc = (acc + bb_ref[...]) * msk
    bufB[base_img:base_img + L, :] = acc.astype(jnp.bfloat16)

    # stage C: 3x3 dilated conv (Cout possibly tiled by the grid)
    acc = None
    for t, off in enumerate(offs_c):
        p = jnp.dot(bufB[off:off + L, :], wc_ref[t * C:(t + 1) * C, :],
                    preferred_element_type=jnp.float32)
        acc = p if acc is None else acc + p
    o_ref[...] = (acc + bc_ref[...]).astype(o_ref.dtype)


@functools.lru_cache(maxsize=None)
def _chain_call(C, ka, L16, mx_in, mxa, mxb, base_img, offs_a, offs_b, offs_c):
    # split the final conv's Cout across 2 grid steps on v7x (both TCs busy);
    # stages A/B are recomputed per step, which is correct on all generations.
    n_ct = 2 if (_CFG["min_steps"] > 1 and C >= 256) else 1
    tc = C // n_ct
    kernel = functools.partial(_chain_kernel, offs_a=offs_a, offs_b=offs_b,
                               offs_c=offs_c, base_img=base_img, L=L16, C=C)
    in_specs = [
        pl.BlockSpec((mx_in, 1), lambda j: (0, 0)),     # image mask
        pl.BlockSpec((mx_in, C), lambda j: (0, 0)),     # padded input slab
        pl.BlockSpec((ka * C, C), lambda j: (0, 0)),    # weights stage A
        pl.BlockSpec((1, C), lambda j: (0, 0)),         # bias stage A
        pl.BlockSpec((ka * C, C), lambda j: (0, 0)),    # weights stage B
        pl.BlockSpec((1, C), lambda j: (0, 0)),         # bias stage B
        pl.BlockSpec((9 * C, tc), lambda j: (0, j)),    # weights stage C (tiled)
        pl.BlockSpec((1, tc), lambda j: (0, j)),        # bias stage C (tiled)
    ]
    return pl.pallas_call(
        kernel,
        out_shape=jax.ShapeDtypeStruct((L16, C), jnp.bfloat16),
        grid_spec=pltpu.PrefetchScalarGridSpec(
            num_scalar_prefetch=0,
            grid=(n_ct,),
            in_specs=in_specs,
            out_specs=pl.BlockSpec((L16, tc), lambda j: (0, j)),
            scratch_shapes=[pltpu.VMEM((mxa, C), jnp.bfloat16),
                            pltpu.VMEM((mxb, C), jnp.bfloat16)],
        ),
        compiler_params=pltpu.CompilerParams(
            dimension_semantics=("parallel",) if n_ct > 1 else ("arbitrary",),
            vmem_limit_bytes=_CFG["vmem"],
        ),
    )


def chain_conv(x, cps):
    """Fused branch chain: conv(1xk,pad(0,pa)) -> conv(kx1,pad(pa,0)) -> conv(3x3,pad pd,dil pd)."""
    cpa, cpb, cpc = cps
    n, h, w, C = x.shape
    ka, pa, pd = cpa.k[1], cpa.p[1], cpc.p[0]
    assert cpa.k == (1, ka) and cpa.p == (0, pa) and cpa.d == (1, 1)
    assert cpb.k == (ka, 1) and cpb.p == (pa, 0) and cpb.d == (1, 1)
    assert cpc.k == (3, 3) and cpc.p == (pd, pd) and cpc.d == (pd, pd)
    assert cpa.cout == cpb.cout == cpc.cout == C
    assert cpa.w2d.shape[1] == C and cpb.w2d.shape[1] == C and cpc.w2d.shape[1] == C
    assert pa <= pd

    P = pd
    HG, WG = h + 2 * P, w + 2 * P
    M = n * HG * WG
    base_img = P * WG + P
    L16 = _rup((n - 1) * HG * WG + (h - 1) * WG + w, 16)
    mx_in = _rup(M, 16) + 16
    base_a = P * WG + (P - pa)
    base_b = (P - pa) * WG + P
    offs_a = tuple(base_a + j for j in range(ka))
    offs_b = tuple(base_b + i * WG for i in range(ka))
    offs_c = tuple(i * pd * WG + j * pd for i in range(3) for j in range(3))
    mxa = _rup(max(base_img, offs_b[-1]) + L16, 16)
    mxb = _rup(max(base_img, offs_c[-1]) + L16, 16)
    assert offs_a[-1] + L16 <= mx_in and base_img + L16 <= mx_in

    xp = jnp.pad(x.astype(jnp.bfloat16),
                 ((0, 0), (P, P), (P, P), (0, 0))).reshape(M, C)
    xf = _fit_rows(xp, mx_in)
    mask = jnp.asarray(_image_mask_np(n, h, w, P, mx_in))

    out = _chain_call(C, ka, L16, mx_in, mxa, mxb, base_img,
                      offs_a, offs_b, offs_c)(
        mask, xf, cpa.w2d, cpa.b, cpb.w2d, cpb.b, cpc.w2d, cpc.b)
    out = _fit_rows(out, M).reshape(n, HG, WG, C)
    return out[:, :h, :w, :]


# ----------------------------------------------------------------------------
# XLA glue: 2x nearest upsample (+ fused skip add)
# ----------------------------------------------------------------------------
def upsample2x(x):
    n, h, w, c = x.shape
    y = jnp.broadcast_to(x[:, :, None, :, None, :], (n, h, 2, w, 2, c))
    return y.reshape(n, 2 * h, 2 * w, c)


def upsample_add(x, skip):
    n, h, w, c = x.shape
    y = jnp.broadcast_to(x[:, :, None, :, None, :], (n, h, 2, w, 2, c))
    return y.reshape(n, 2 * h, 2 * w, c) + skip


# ----------------------------------------------------------------------------
# Parameter construction (deterministic, synthetic; BN folded into weights)
# ----------------------------------------------------------------------------
class KeyGen:
    def __init__(self, seed=0):
        self.key = jax.random.PRNGKey(seed)
        self.i = 0

    def __call__(self):
        self.i += 1
        return jax.random.fold_in(self.key, self.i)


def make_basic_conv(kg, cin, cout, kh, kw, ph=0, pw=0, dh=1, dw=1):
    fan_in = cin * kh * kw
    w = jax.random.normal(kg(), (kh * kw, cin, cout), jnp.float32)
    w = w * (2.0 / fan_in) ** 0.5
    gamma = 1.0 + 0.1 * jax.random.normal(kg(), (cout,), jnp.float32)
    beta = 0.1 * jax.random.normal(kg(), (cout,), jnp.float32)
    mean = 0.1 * jax.random.normal(kg(), (cout,), jnp.float32)
    var = jnp.abs(jax.random.normal(kg(), (cout,), jnp.float32)) * 0.1 + 1.0
    scale = gamma * jax.lax.rsqrt(var + 1e-5)
    bias = beta - mean * scale
    w = w * scale                                    # fold BN scale into weights

    cout_p = max(128, ((cout + 127) // 128) * 128)   # lane-dense output channels
    if cout_p != cout:
        w = jnp.pad(w, ((0, 0), (0, 0), (0, cout_p - cout)))
        bias = jnp.pad(bias, (0, cout_p - cout))
    return ConvParam(
        w2d=w.reshape(kh * kw * cin, cout_p).astype(jnp.bfloat16),
        b=bias.reshape(1, cout_p).astype(jnp.float32),
        k=(kh, kw), p=(ph, pw), d=(dh, dw), cout=cout)


def fuse_pointwise(cps):
    """Concatenate several 1x1 convs applied to the same input into one conv."""
    for cp in cps:
        assert cp.k == (1, 1) and cp.w2d.shape[1] == cp.cout
    w = jnp.concatenate([cp.w2d for cp in cps], axis=1)
    b = jnp.concatenate([cp.b for cp in cps], axis=1)
    cout = sum(cp.cout for cp in cps)
    return ConvParam(w, b, (1, 1), (0, 0), (1, 1), cout)


def make_rfb(kg, cin, cout):
    bc = make_basic_conv
    # branch0/1/2/3 entry 1x1 convs + conv_res fused into one matmul (Cout=5*cout)
    entry = fuse_pointwise([bc(kg, cin, cout, 1, 1),      # branch0
                            bc(kg, cin, cout, 1, 1),      # branch1 entry
                            bc(kg, cin, cout, 1, 1),      # branch2 entry
                            bc(kg, cin, cout, 1, 1),      # branch3 entry
                            bc(kg, cin, cout, 1, 1)])     # conv_res
    return {
        "entry": entry,
        "b1": [bc(kg, cout, cout, 1, 3, 0, 1),
               bc(kg, cout, cout, 3, 1, 1, 0),
               bc(kg, cout, cout, 3, 3, 3, 3, 3, 3)],
        "b2": [bc(kg, cout, cout, 1, 5, 0, 2),
               bc(kg, cout, cout, 5, 1, 2, 0),
               bc(kg, cout, cout, 3, 3, 5, 5, 5, 5)],
        "b3": [bc(kg, cout, cout, 1, 7, 0, 3),
               bc(kg, cout, cout, 7, 1, 3, 0),
               bc(kg, cout, cout, 3, 3, 7, 7, 7, 7)],
        "conv_cat": bc(kg, 4 * cout, cout, 3, 3, 1, 1),
    }


def make_de_block(kg, cin, cout):
    return {"conv": make_basic_conv(kg, cin, cout, 3, 3, 1, 1)}


def make_decoder_a(kg):
    return {
        "rgb_con3": make_de_block(kg, 128, 64),
        "rgb_con4": make_de_block(kg, 256, 128),
        "rgb_con5": make_de_block(kg, 512, 256),
        "depth_con3": make_de_block(kg, 128, 64),
        "depth_con4": make_de_block(kg, 256, 128),
        "depth_con5": make_de_block(kg, 512, 256),
        "rgbEn3": make_rfb(kg, 128, 128),
        "rgbEn4": make_rfb(kg, 256, 256),
        "rgbEn5": make_rfb(kg, 512, 512),
        "depthEn3": make_rfb(kg, 128, 128),
        "depthEn4": make_rfb(kg, 256, 256),
        "depthEn5": make_rfb(kg, 512, 512),
    }


# ----------------------------------------------------------------------------
# Module forward passes (NHWC inside; wrapped in a single jax.jit at the call)
# ----------------------------------------------------------------------------
def rfb_forward(p, x):
    c = p["conv_cat"].cout
    ent = conv_bn(x, p["entry"])                      # fused 5x 1x1 convs
    x0 = ent[..., 0 * c:1 * c]
    x_res = ent[..., 4 * c:5 * c]
    t1 = chain_conv(ent[..., 1 * c:2 * c], tuple(p["b1"]))
    t2 = chain_conv(ent[..., 2 * c:3 * c], tuple(p["b2"]))
    t3 = chain_conv(ent[..., 3 * c:4 * c], tuple(p["b3"]))
    x_cat = jnp.concatenate([x0, t1, t2, t3], axis=-1)
    # relu(conv_cat(cat) + conv_res(x)) — add + ReLU fused into conv epilogue
    return conv_bn(x_cat, p["conv_cat"], relu=True, residual=x_res)


def decoder_a_forward(P, rgb_3, rgb_4, rgb_5, depth_3, depth_4, depth_5):
    nhwc = lambda t: jnp.transpose(t, (0, 2, 3, 1)).astype(jnp.bfloat16)
    nchw = lambda t: jnp.transpose(t, (0, 3, 1, 2)).astype(jnp.float32)

    def run(prefix, f3, f4, f5):
        # TODO(synk): DeResNet34_k source not given; modeled as 3x3 conv+BN+ReLU
        # (channel halving) followed by nearest 2x upsample.
        d5 = conv_bn(rfb_forward(P[prefix + "En5"], f5),
                     P[prefix + "_con5"]["conv"], relu=True)
        d4 = conv_bn(rfb_forward(P[prefix + "En4"], upsample_add(d5, f4)),
                     P[prefix + "_con4"]["conv"], relu=True)
        d3 = conv_bn(rfb_forward(P[prefix + "En3"], upsample_add(d4, f3)),
                     P[prefix + "_con3"]["conv"], relu=True)
        return upsample2x(d3)

    rgb_out = run("rgb", nhwc(rgb_3), nhwc(rgb_4), nhwc(rgb_5))
    depth_out = run("depth", nhwc(depth_3), nhwc(depth_4), nhwc(depth_5))
    return nchw(rgb_out), nchw(depth_out)


# ----------------------------------------------------------------------------
# Self-tests against lax.conv (single dilated conv, and a fused branch chain)
# ----------------------------------------------------------------------------
def _lax_conv(x, w4, pad, dil):
    return jax.lax.conv_general_dilated(
        x, w4, window_strides=(1, 1), padding=pad, rhs_dilation=dil,
        dimension_numbers=("NHWC", "HWIO", "NHWC"))


def _selftest_conv():
    key = jax.random.PRNGKey(123)
    kx, kw = jax.random.split(key)
    x = jax.random.normal(kx, (1, 10, 12, 128), jnp.float32)
    w4 = jax.random.normal(kw, (3, 3, 128, 128), jnp.float32) * (2.0 / (9 * 128)) ** 0.5
    cp = ConvParam(w2d=w4.reshape(9 * 128, 128).astype(jnp.bfloat16),
                   b=jnp.zeros((1, 128), jnp.float32),
                   k=(3, 3), p=(3, 3), d=(3, 3), cout=128)
    got = jax.jit(lambda xx: conv_bn(xx, cp))(x).astype(jnp.float32)
    ref = _lax_conv(x, w4, ((3, 3), (3, 3)), (3, 3))
    err = float(jnp.max(jnp.abs(got - ref)))
    assert err < 0.15, f"conv self-test max abs err {err}"


def _selftest_chain():
    key = jax.random.PRNGKey(7)
    ks = jax.random.split(key, 4)
    C, h, w = 128, 8, 8
    x = 0.5 * jax.random.normal(ks[0], (1, h, w, C), jnp.float32)

    def mk(kk, kh, kw, ph, pw, d):
        w4 = jax.random.normal(kk, (kh, kw, C, C), jnp.float32)
        w4 = w4 * (1.0 / (kh * kw * C)) ** 0.5
        cp = ConvParam(w2d=w4.reshape(kh * kw * C, C).astype(jnp.bfloat16),
                       b=jnp.zeros((1, C), jnp.float32),
                       k=(kh, kw), p=(ph, pw), d=(d, d), cout=C)
        return cp, w4

    (ca, wa4) = mk(ks[1], 1, 3, 0, 1, 1)
    (cb, wb4) = mk(ks[2], 3, 1, 1, 0, 1)
    (cc, wc4) = mk(ks[3], 3, 3, 3, 3, 3)
    got = jax.jit(lambda xx: chain_conv(xx, (ca, cb, cc)))(x).astype(jnp.float32)
    ref = _lax_conv(x, wa4, ((0, 0), (1, 1)), (1, 1))
    ref = _lax_conv(ref, wb4, ((1, 1), (0, 0)), (1, 1))
    ref = _lax_conv(ref, wc4, ((3, 3), (3, 3)), (3, 3))
    err = float(jnp.max(jnp.abs(got - ref)))
    assert err < 0.25, f"chain self-test max abs err {err}"


# ----------------------------------------------------------------------------
if __name__ == "__main__":
    _selftest_conv()
    _selftest_chain()

    key = jax.random.PRNGKey(0)
    k3, k4, k5, d3, d4, d5 = jax.random.split(key, 6)
    N = 1
    # NCHW inputs (PyTorch convention): ResNet34 stages 3/4/5 feature maps.
    rgb_3 = jax.random.normal(k3, (N, 128, 16, 16), jnp.float32)
    rgb_4 = jax.random.normal(k4, (N, 256, 8, 8), jnp.float32)
    rgb_5 = jax.random.normal(k5, (N, 512, 4, 4), jnp.float32)
    depth_3 = jax.random.normal(d3, (N, 128, 16, 16), jnp.float32)
    depth_4 = jax.random.normal(d4, (N, 256, 8, 8), jnp.float32)
    depth_5 = jax.random.normal(d5, (N, 512, 4, 4), jnp.float32)

    params = make_decoder_a(KeyGen(0))

    fwd = jax.jit(decoder_a_forward)
    rgb_out, depth_out = fwd(params, rgb_3, rgb_4, rgb_5,
                             depth_3, depth_4, depth_5)
    jax.block_until_ready((rgb_out, depth_out))

    assert rgb_out.shape == (N, 64, 32, 32), rgb_out.shape
    assert depth_out.shape == (N, 64, 32, 32), depth_out.shape
    assert bool(jnp.all(jnp.isfinite(rgb_out))) and bool(jnp.all(jnp.isfinite(depth_out)))
    print("KERNEL_OK")
</pallas_src>

<mosaic_0001>
module attributes {stable_mosaic.version = 11 : i64} {
  func.func @_conv_kernel(%arg0: i32, %arg1: memref<304x128xbf16, #tpu.memory_space<vmem>>, %arg2: memref<1152x128xbf16, #tpu.memory_space<vmem>>, %arg3: memref<1x128xf32, #tpu.memory_space<vmem>>, %arg4: memref<176x128xbf16, #tpu.memory_space<vmem>>) attributes {dimension_semantics = [#tpu.dimension_semantics<parallel>], iteration_bounds = array<i64: 1>, scalar_prefetch = 0 : i64, scratch_operands = 0 : i64, tpu.core_type = #tpu.core_type<tc>, window_params = [{pipeline_mode = #tpu.pipeline_mode<synchronous>, transform_indices = @transform_0, window_bounds = array<i64: 304, 128>}, {transform_indices = @transform_1, window_bounds = array<i64: 1152, 128>}, {transform_indices = @transform_2, window_bounds = array<i64: 1, 128>}, {transform_indices = @transform_3, window_bounds = array<i64: 176, 128>}]} {
    %c0 = arith.constant 0 : index
    %c0_0 = arith.constant 0 : index
    %0 = vector.load %arg1[%c0, %c0_0] : memref<304x128xbf16, #tpu.memory_space<vmem>>, vector<176x128xbf16>
    %c0_1 = arith.constant 0 : index
    %c0_2 = arith.constant 0 : index
    %1 = vector.load %arg2[%c0_1, %c0_2] : memref<1152x128xbf16, #tpu.memory_space<vmem>>, vector<128x128xbf16>
    %cst = arith.constant dense<0.000000e+00> : vector<176x128xf32>
    %2 = tpu.matmul %0, %1, %cst {dimension_numbers = #tpu.dot_dimension_numbers<[1], [0], [0], [1], [0, 0, 1, 1], [], []>} : vector<176x128xbf16>, vector<128x128xbf16>, vector<176x128xf32> -> vector<176x128xf32>
    %c3 = arith.constant 3 : index
    %c0_3 = arith.constant 0 : index
    %3 = vector.load %arg1[%c3, %c0_3] : memref<304x128xbf16, #tpu.memory_space<vmem>>, vector<176x128xbf16>
    %c128 = arith.constant 128 : index
    %c0_4 = arith.constant 0 : index
    %4 = vector.load %arg2[%c128, %c0_4] : memref<1152x128xbf16, #tpu.memory_space<vmem>>, vector<128x128xbf16>
    %cst_5 = arith.constant dense<0.000000e+00> : vector<176x128xf32>
    %5 = tpu.matmul %3, %4, %cst_5 {dimension_numbers = #tpu.dot_dimension_numbers<[1], [0], [0], [1], [0, 0, 1, 1], [], []>} : vector<176x128xbf16>, vector<128x128xbf16>, vector<176x128xf32> -> vector<176x128xf32>
    %6 = arith.addf %2, %5 : vector<176x128xf32>
    %c6 = arith.constant 6 : index
    %c0_6 = arith.constant 0 : index
    %7 = vector.load %arg1[%c6, %c0_6] : memref<304x128xbf16, #tpu.memory_space<vmem>>, vector<176x128xbf16>
    %c256 = arith.constant 256 : index
    %c0_7 = arith.constant 0 : index
    %8 = vector.load %arg2[%c256, %c0_7] : memref<1152x128xbf16, #tpu.memory_space<vmem>>, vector<128x128xbf16>
    %cst_8 = arith.constant dense<0.000000e+00> : vector<176x128xf32>
    %9 = tpu.matmul %7, %8, %cst_8 {dimension_numbers = #tpu.dot_dimension_numbers<[1], [0], [0], [1], [0, 0, 1, 1], [], []>} : vector<176x128xbf16>, vector<128x128xbf16>, vector<176x128xf32> -> vector<176x128xf32>
    %10 = arith.addf %6, %9 : vector<176x128xf32>
    %c54 = arith.constant 54 : index
    %c0_9 = arith.constant 0 : index
    %11 = vector.load %arg1[%c54, %c0_9] : memref<304x128xbf16, #tpu.memory_space<vmem>>, vector<176x128xbf16>
    %c384 = arith.constant 384 : index
    %c0_10 = arith.constant 0 : index
    %12 = vector.load %arg2[%c384, %c0_10] : memref<1152x128xbf16, #tpu.memory_space<vmem>>, vector<128x128xbf16>
    %cst_11 = arith.constant dense<0.000000e+00> : vector<176x128xf32>
    %13 = tpu.matmul %11, %12, %cst_11 {dimension_numbers = #tpu.dot_dimension_numbers<[1], [0], [0], [1], [0, 0, 1, 1], [], []>} : vector<176x128xbf16>, vector<128x128xbf16>, vector<176x128xf32> -> vector<176x128xf32>
    %14 = arith.addf %10, %13 : vector<176x128xf32>
    %c57 = arith.constant 57 : index
    %c0_12 = arith.constant 0 : index
    %15 = vector.load %arg1[%c57, %c0_12] : memref<304x128xbf16, #tpu.memory_space<vmem>>, vector<176x128xbf16>
    %c512 = arith.constant 512 : index
    %c0_13 = arith.constant 0 : index
    %16 = vector.load %arg2[%c512, %c0_13] : memref<1152x128xbf16, #tpu.memory_space<vmem>>, vector<128x128xbf16>
    %cst_14 = arith.constant dense<0.000000e+00> : vector<176x128xf32>
    %17 = tpu.matmul %15, %16, %cst_14 {dimension_numbers = #tpu.dot_dimension_numbers<[1], [0], [0], [1], [0, 0, 1, 1], [], []>} : vector<176x128xbf16>, vector<128x128xbf16>, vector<176x128xf32> -> vector<176x128xf32>
    %18 = arith.addf %14, %17 : vector<176x128xf32>
    %c60 = arith.constant 60 : index
    %c0_15 = arith.constant 0 : index
    %19 = vector.load %arg1[%c60, %c0_15] : memref<304x128xbf16, #tpu.memory_space<vmem>>, vector<176x128xbf16>
    %c640 = arith.constant 640 : index
    %c0_16 = arith.constant 0 : index
    %20 = vector.load %arg2[%c640, %c0_16] : memref<1152x128xbf16, #tpu.memory_space<vmem>>, vector<128x128xbf16>
    %cst_17 = arith.constant dense<0.000000e+00> : vector<176x128xf32>
    %21 = tpu.matmul %19, %20, %cst_17 {dimension_numbers = #tpu.dot_dimension_numbers<[1], [0], [0], [1], [0, 0, 1, 1], [], []>} : vector<176x128xbf16>, vector<128x128xbf16>, vector<176x128xf32> -> vector<176x128xf32>
    %22 = arith.addf %18, %21 : vector<176x128xf32>
    %c108 = arith.constant 108 : index
    %c0_18 = arith.constant 0 : index
    %23 = vector.load %arg1[%c108, %c0_18] : memref<304x128xbf16, #tpu.memory_space<vmem>>, vector<176x128xbf16>
    %c768 = arith.constant 768 : index
    %c0_19 = arith.constant 0 : index
    %24 = vector.load %arg2[%c768, %c0_19] : memref<1152x128xbf16, #tpu.memory_space<vmem>>, vector<128x128xbf16>
    %cst_20 = arith.constant dense<0.000000e+00> : vector<176x128xf32>
    %25 = tpu.matmul %23, %24, %cst_20 {dimension_numbers = #tpu.dot_dimension_numbers<[1], [0], [0], [1], [0, 0, 1, 1], [], []>} : vector<176x128xbf16>, vector<128x128xbf16>, vector<176x128xf32> -> vector<176x128xf32>
    %26 = arith.addf %22, %25 : vector<176x128xf32>
    %c111 = arith.constant 111 : index
    %c0_21 = arith.constant 0 : index
    %27 = vector.load %arg1[%c111, %c0_21] : memref<304x128xbf16, #tpu.memory_space<vmem>>, vector<176x128xbf16>
    %c896 = arith.constant 896 : index
    %c0_22 = arith.constant 0 : index
    %28 = vector.load %arg2[%c896, %c0_22] : memref<1152x128xbf16, #tpu.memory_space<vmem>>, vector<128x128xbf16>
    %cst_23 = arith.constant dense<0.000000e+00> : vector<176x128xf32>
    %29 = tpu.matmul %27, %28, %cst_23 {dimension_numbers = #tpu.dot_dimension_numbers<[1], [0], [0], [1], [0, 0, 1, 1], [], []>} : vector<176x128xbf16>, vector<128x128xbf16>, vector<176x128xf32> -> vector<176x128xf32>
    %30 = arith.addf %26, %29 : vector<176x128xf32>
    %c114 = arith.constant 114 : index
    %c0_24 = arith.constant 0 : index
    %31 = vector.load %arg1[%c114, %c0_24] : memref<304x128xbf16, #tpu.memory_space<vmem>>, vector<176x128xbf16>
    %c1024 = arith.constant 1024 : index
    %c0_25 = arith.constant 0 : index
    %32 = vector.load %arg2[%c1024, %c0_25] : memref<1152x128xbf16, #tpu.memory_space<vmem>>, vector<128x128xbf16>
    %cst_26 = arith.constant dense<0.000000e+00> : vector<176x128xf32>
    %33 = tpu.matmul %31, %32, %cst_26 {dimension_numbers = #tpu.dot_dimension_numbers<[1], [0], [0], [1], [0, 0, 1, 1], [], []>} : vector<176x128xbf16>, vector<128x128xbf16>, vector<176x128xf32> -> vector<176x128xf32>
    %34 = arith.addf %30, %33 : vector<176x128xf32>
    %c0_27 = arith.constant 0 : index
    %c0_28 = arith.constant 0 : index
    %35 = vector.load %arg3[%c0_27, %c0_28] : memref<1x128xf32, #tpu.memory_space<vmem>>, vector<1x128xf32>
    %36 = vector.broadcast %35 : vector<1x128xf32> to vector<176x128xf32>
    %37 = arith.addf %34, %36 : vector<176x128xf32>
    %38 = arith.truncf %37 : vector<176x128xf32> to vector<176x128xbf16>
    %c0_29 = arith.constant 0 : index
    %c0_30 = arith.constant 0 : index
    %39 = vector.load %arg4[%c0_29, %c0_30] : memref<176x128xbf16, #tpu.memory_space<vmem>>, vector<176x128xbf16>
    tpu.vector_store %arg4[%c0_29, %c0_30], %38 {strides = array<i32>} : memref<176x128xbf16, #tpu.memory_space<vmem>>, vector<176x128xbf16>,
    return
  }
  func.func @transform_0(%arg0: i32) -> (i32, i32) {
    %c0_i32 = arith.constant 0 : i32
    %c0_i32_0 = arith.constant 0 : i32
    %c0_i32_1 = arith.constant 0 : i32
    return %c0_i32, %c0_i32_0 : i32, i32
  }
  func.func @transform_1(%arg0: i32) -> (i32, i32) {
    %c0_i32 = arith.constant 0 : i32
    %c0_i32_0 = arith.constant 0 : i32
    return %c0_i32, %arg0 : i32, i32
  }
  func.func @transform_2(%arg0: i32) -> (i32, i32) {
    %c0_i32 = arith.constant 0 : i32
    %c0_i32_0 = arith.constant 0 : i32
    return %c0_i32, %arg0 : i32, i32
  }
  func.func @transform_3(%arg0: i32) -> (i32, i32) {
    %c0_i32 = arith.constant 0 : i32
    %c0_i32_0 = arith.constant 0 : i32
    return %c0_i32, %arg0 : i32, i32
  }
}

</mosaic_0001>

<bundles_post_ra>
// kernel: _lambda_.1
= control target key start
LH: loop header
LB: loop body
LE: loop exit
PB: predicated region body
PF: predicated region fallthrough
CT: control target
= control target key end

     0   :  { %v4053_v0 = vmov 0.0   ;;  %vm4054_vm0 = vmmov 0   ;;  %vm129_vm1 = vsmask.f32 6400  ;;  %vm624_vm2 = vcmask 1044480   ;;  %s5377_s1 = inlined_call_operand.vmem [shape: bf16[1152,128], index: 1, kind: input, shape index: {}]   ;;  %s5378_s0 = inlined_call_operand.vmem [shape: bf16[304,128], index: 0, kind: input, shape index: {}]   ;;  %s5379_s2 = inlined_call_operand.vmem [shape: f32[1,128], index: 2, kind: input, shape index: {}]   ;;  %s5380_s3 = inlined_call_operand.vmem [shape: bf16[176,128], index: 3, kind: output, shape index: {}]  }
   0x1   :  { %3356 = vmatprep.subr.bf16.mxu0 %v4053_v0  ;;  %3896 = vmatprep.subr.bf16.mxu1 %v4053_v0  ;;  %v3914_v1 = vld [vmem:[%s5377_s1 + $0x78] sm:$0xff]   ;;  %v3915_v2 = vld [vmem:[%s5377_s1 + $0x70] sm:$0xff]   ;;  %v3916_v3 = vld [vmem:[%s5377_s1 + $0x68] sm:$0xff]   ;;  %vm1588_vm3 = vcmask 1045504   ;;  %vm1269_vm4 = vsmask.f32 7424 }
   0x2   :  { %3372 = vmatprep.mubr.msk.bf16.mxu0 %vm4054_vm0, %v4053_v0  ;;  %3396 = vmatprep.mubr.msk.bf16.mxu1 %vm4054_vm0, %v4053_v0  ;;  %v3917_v4 = vld [vmem:[%s5377_s1 + $0x60] sm:$0xff]   ;;  %v4108_v7 = vld [vmem:[%s5378_s0 + $0x8] sm:$0xff]   ;;  %v4116_v9 = vld [vmem:[%s5378_s0 + $0x30] sm:$0xff]   ;;  %vm2160_vm5 = vsmask.f32 4352  ;;  %vm2567_vm6 = vcmask 1046528  }
   0x3   :  { %3357 = vmatpush3.bf16.msra.mxu0 %v3914_v1  ;;  %3904 = vmatpush3.bf16.msra.mxu1 %v3914_v1  ;;  %v4100_v5 = vld [vmem:[%s5378_s0 + $0x4] sm:$0xf]  ;;  %v53_v6 = vld [vmem:[%s5378_s0] sm:$0xe]  ;;  %v3918_v10 = vld [vmem:[%s5377_s1 + $0x58] sm:$0xff]   ;;  %v139_v11 = vshrl.u32 %v4108_v7, 16 }
   0x4   :  { %3358 = vmatprep.subr.bf16.mxu0 %v4053_v0  ;;  %3897 = vmatprep.subr.bf16.mxu1 %v4053_v0  ;;  %v2936_v8 = vcombine.low %v53_v6, %v4100_v5  ;;  %v142_v12 = vshll.u32 %v4108_v7, 16  ;;  %v4126_v13 = vld [vmem:[%s5378_s0 + $0x38] sm:$0xff]   ;;  %v3919_v14 = vld [vmem:[%s5377_s1 + $0x50] sm:$0xff]   ;;  %v184_v17 = vshrl.u32 %v4116_v9, 16  ;;  %v187_v18 = vshll.u32 %v4116_v9, 16  ;;  %v3920_v23 = vld [vmem:[%s5377_s1 + $0x48] sm:$0xff]  }
   0x5   :  { %v141_v19 = vrot.slane %v139_v11, 1  ;;  %v193_v21 = vshrl.u32 %v4126_v13, 16  ;;  %v196_v22 = vshll.u32 %v4126_v13, 16  ;;  %v4145_v27 = vld [vmem:[%s5378_s0 + $0x10] sm:$0xff]   ;;  %v4150_v29 = vld [vmem:[%s5378_s0 + $0x40] sm:$0xff]   ;;  %v4168_v41 = vld [vmem:[%s5378_s0 + $0x18] sm:$0xff]  }
   0x6   :  { %v131_v15 = vshrl.u32 %v2936_v8, 16  ;;  %v134_v16 = vshll.u32 %v2936_v8, 16  ;;  %v144_v20 = vrot.slane %v142_v12, 2  ;;  %v186_v26 = vrot.slane %v184_v17, 1  ;;  %v3921_v36 = vld [vmem:[%s5377_s1 + $0x40] sm:$0xff]   ;;  %v3926_v42 = vld [vmem:[%s5377_s1 + $0xb8] sm:$0xff]  }
   0x7   :  { %3359 = vmatpush3.bf16.msra.mxu0 %v3915_v2  ;;  %3905 = vmatpush3.bf16.msra.mxu1 %v3915_v2  ;;  %v189_v28 = vrot.slane %v187_v18, 2  ;;  %v195_v30 = vrot.slane %v193_v21, 1  ;;  %v198_v31 = vrot.slane %v196_v22, 2  ;;  %v148_v33 = vshrl.u32 %v4145_v27, 16  ;;  %v4179_v49 = vld [vmem:[%s5378_s0 + $0x48] sm:$0xff]   ;;  %v3927_v50 = vld [vmem:[%s5377_s1 + $0x38] sm:$0xff]  }
   0x8   :  { %3360 = vmatprep.subr.bf16.mxu0 %v4053_v0  ;;  %3898 = vmatprep.subr.bf16.mxu1 %v4053_v0  ;;  %v133_v24 = vrot.slane %v131_v15, 1  ;;  %v136_v25 = vrot.slane %v134_v16, 2  ;;  %v145_v32 = vor.u32 %v144_v20, %v141_v19  ;;  %v151_v34 = vshll.u32 %v4145_v27, 16  ;;  %v3928_v53 = vld [vmem:[%s5377_s1 + $0xb0] sm:$0xff]   ;;  %v4201_v58 = vld [vmem:[%s5378_s0 + $0x20] sm:$0xff]   ;;  %v3932_v61 = vld [vmem:[%s5377_s1 + $0xa8] sm:$0xff]  }
   0x9   :  { %v202_v35 = vshrl.u32 %v4150_v29, 16  ;;  %v4160_v38 = vor.u32 %v189_v28, %v186_v26  ;;  %v199_v39 = vor.u32 %v198_v31, %v195_v30  ;;  %v205_v40 = vshll.u32 %v4150_v29, 16  ;;  %v3931_v59 = vld [vmem:[%s5377_s1 + $0x30] sm:$0xff]   ;;  %v3935_v6 = vld [vmem:[%s5377_s1 + $0x28] sm:$0xff]   ;;  %v3937_v17 = vld [vmem:[%s5377_s1 + $0x20] sm:$0xff]  }
   0xa   :  { %v137_v37 = vor.u32 %v136_v25, %v133_v24  ;;  %v150_v43 = vrot.slane %v148_v33, 1  ;;  %v153_v44 = vrot.slane %v151_v34, 2  ;;  %v157_v51 = vshrl.u32 %v4168_v41, 16  ;;  %v3945_v19 = vld [vmem:[%s5378_s0 + $0x58] ss:$0 sps:$4 sm:$0x33]  }
   0xb   :  { %3361 = vmatpush3.bf16.msra.mxu0 %v3916_v3  ;;  %3906 = vmatpush3.bf16.msra.mxu1 %v3916_v3  ;;  %v204_v45 = vrot.slane %v202_v35, 1  ;;  %v200_v47 = vsel %vm129_vm1, %v4160_v38, %v199_v39  ;;  %v207_v48 = vrot.slane %v205_v40, 2  ;;  %v160_v55 = vshll.u32 %v4168_v41, 16  ;;  %v4244_v21 = vld [vmem:[%s5378_s0 + $0x28] sm:$0xff]   ;;  %v3941_v26 = vld [vmem:[%s5377_s1 + $0x98] sm:$0xff]  }
   0xc   :  { %3362 = vmatprep.subr.bf16.mxu0 %v4053_v0  ;;  %3899 = vmatprep.subr.bf16.mxu1 %v4053_v0  ;;  %v146_v46 = vsel %vm129_vm1, %v137_v37, %v145_v32  ;;  %v154_v52 = vor.u32 %v153_v44, %v150_v43  ;;  %v211_v56 = vshrl.u32 %v4179_v49, 16  ;;  %v214_v57 = vshll.u32 %v4179_v49, 16  ;;  %v3940_v28 = vld [vmem:[%s5377_s1 + $0x18] sm:$0xff]   ;;  %v3942_v37 = vld [vmem:[%s5377_s1 + $0x10] sm:$0xff]  }
   0xd   :  { %v208_v54 = vor.u32 %v207_v48, %v204_v45  ;;  %v159_v62 = vrot.slane %v157_v51, 1  ;;  %v162_v1 = vrot.slane %v160_v55, 2  ;;  %v166_v8 = vshrl.u32 %v4201_v58, 16  ;;  %v3950_v51 = vld [vmem:[%s5377_s1 + $0x80] sm:$0xff]  }
   0xe   :  { %v155_v60 = vsel %vm129_vm1, %v145_v32, %v154_v52  ;;  %v213_v2 = vrot.slane %v211_v56, 1  ;;  %v216_v3 = vrot.slane %v214_v57, 2  ;;  %v169_v11 = vshll.u32 %v4201_v58, 16  ;;  %v15_v55 = vld [vmem:[%s5378_s0] sm:$0xf] }
   0xf   :  { %3363 = vmatpush3.bf16.msra.mxu0 %v3917_v4  ;;  %3907 = vmatpush3.bf16.msra.mxu1 %v3917_v4  ;;  %v209_v63 = vsel %vm129_vm1, %v199_v39, %v208_v54  ;;  %v4215_v4 = vld [vmem:[%s5378_s0 + $0x50] sm:$0xff]   ;;  %v163_v12 = vor.u32 %v162_v1, %v159_v62  ;;  %v168_v18 = vrot.slane %v166_v8, 1  ;;  %v175_v30 = vshrl.u32 %v4244_v21, 16  ;;  %v600_v56 = vld [vmem:[%s5378_s0] sm:$0x8]  ;;  %v3953_v1 = vld [vmem:[%s5377_s1 + $0x138] sm:$0xff]  }
  0x10   :  { %3364 = vmatprep.subr.bf16.mxu0 %v4053_v0  ;;  %3900 = vmatprep.subr.bf16.mxu1 %v4053_v0  ;;  %v220_v15 = vshrl.u32 %v4215_v4, 16  ;;  %v223_v16 = vshll.u32 %v4215_v4, 16  ;;  %v171_v20 = vrot.slane %v169_v11, 2  ;;  %v178_v31 = vshll.u32 %v4244_v21, 16  ;;  %v3960_v11 = vld [vmem:[%s5377_s1 + $0xd8] sm:$0xff]  }
  0x11   :  { %v164_v22 = vsel %vm129_vm1, %v154_v52, %v163_v12  ;;  %v229_v34 = vshrl.u32 %v3945_v19, 16  ;;  %v232_v35 = vshll.u32 %v3945_v19, 16  ;;  %v177_v39 = vrot.slane %v175_v30, 1  ;;  %v3947_v52 = vld [vmem:[%s5377_s1] sm:$0xff]   ;;  %v3963_v19 = vld [vmem:[%s5377_s1 + $0x110] sm:$0xff]  }
  0x12   :  { %v222_v24 = vrot.slane %v220_v15, 1  ;;  %v225_v25 = vrot.slane %v223_v16, 2  ;;  %v172_v32 = vor.u32 %v171_v20, %v168_v18  ;;  %v180_v40 = vrot.slane %v178_v31, 2  ;;  %v3961_v15 = vld [vmem:[%s5377_s1 + $0x118] sm:$0xff]  }
  0x13   :  { %3365 = vmatpush3.bf16.msra.mxu0 %v3918_v10  ;;  %3908 = vmatpush3.bf16.msra.mxu1 %v3918_v10  ;;  %v3936_v10 = vld [vmem:[%s5377_s1 + $0xa0] sm:$0xff]   ;;  %v231_v44 = vrot.slane %v229_v34, 1  ;;  %v234_v45 = vrot.slane %v232_v35, 2  ;;  %v2956_v57 = vcombine.low %v15_v55, %v4100_v5  ;;  %v632_v18 = vrot.slane %v4201_v58, 3 }
  0x14   :  { %3366 = vmatprep.subr.bf16.mxu0 %v4053_v0  ;;  %3901 = vmatprep.subr.bf16.mxu1 %v4053_v0  ;;  %v226_v33 = vor.u32 %v225_v25, %v222_v24  ;;  %v181_v48 = vor.u32 %v180_v40, %v177_v39  ;;  %v3967_v24 = vld [vmem:[%s5377_s1 + $0x100] sm:$0xff]   ;;  %v636_v25 = vrot.slane %v4116_v9, 3  ;;  %v638_v34 = vrot.slane %v4126_v13, 3 }
  0x17   :  { %3367 = vmatpush3.bf16.msra.mxu0 %v3919_v14  ;;  %3909 = vmatpush3.bf16.msra.mxu1 %v3919_v14  ;;  %v217_v14 = vor.u32 %v216_v3, %v213_v2  ;;  %v3956_v2 = vld [vmem:[%s5377_s1 + $0xe8] sm:$0xff]   ;;  %v628_v3 = vrot.slane %v4145_v27, 3 }
  0x18   :  { %3368 = vmatprep.subr.bf16.mxu0 %v4053_v0  ;;  %3902 = vmatprep.subr.bf16.mxu1 %v4053_v0 }
  0x19   :  { %v227_v43 = vsel %vm129_vm1, %v217_v14, %v226_v33 }
  0x1b   :  { %3369 = vmatpush3.bf16.msra.mxu0 %v3920_v23  ;;  %3910 = vmatpush3.bf16.msra.mxu1 %v3920_v23  ;;  %v218_v23 = vsel %vm129_vm1, %v208_v54, %v217_v14  ;;  %v3959_v14 = vld [vmem:[%s5377_s1 + $0x120] sm:$0xff]  }
  0x1c   :  { %3370 = vmatprep.subr.bf16.mxu0 %v4053_v0  ;;  %3903 = vmatprep.subr.bf16.mxu1 %v4053_v0 }
  0x1f   :  { %3371 = vmatpush3.bf16.msra.mxu0 %v3921_v36  ;;  %3911 = vmatpush3.bf16.msra.mxu1 %v3921_v36  ;;  %v3943_v36 = vld [vmem:[%s5377_s1 + $0x90] sm:$0xff]  }
  0x20   :  { %3476 = vmatprep.subr.bf16.mxu0 %v4053_v0  ;;  %3416 = vmatprep.subr.bf16.mxu1 %v4053_v0 }
  0x22   :  { %3373 = vmatmul.mubr.bf16.vlgmr.msra.gmra.mxu0 %v146_v46  ;;  %3397 = vmatmul.mubr.bf16.vlgmr.msra.gmra.mxu1 %v200_v47  ;;  %v3948_v46 = vld [vmem:[%s5377_s1 + $0x88] sm:$0xff]  }
  0x23   :  { %3477 = vmatpush3.bf16.msra.mxu0 %v3926_v42  ;;  %3376 = vmatprep.mubr.msk.bf16.mxu0 %vm4054_vm0, %v4053_v0  ;;  %v173_v42 = vsel %vm129_vm1, %v163_v12, %v172_v32  ;;  %v3946_v47 = vld [vmem:[%s5377_s1 + $0x8] sm:$0xff]   ;;  %v630_v12 = vrot.slane %v4168_v41, 3 }
  0x24   :  { %3478 = vmatprep.subr.bf16.mxu0 %v4053_v0  ;;  %3400 = vmatprep.mubr.msk.bf16.mxu1 %vm4054_vm0, %v4053_v0 }
  0x25   :  { %3417 = vmatpush3.bf16.msra.mxu1 %v3927_v50  ;;  %v235_v50 = vor.u32 %v234_v45, %v231_v44  ;;  %v631_v16 = vsel %vm624_vm2, %v628_v3, %v630_v12  ;;  %v633_v20 = vsel %vm624_vm2, %v630_v12, %v632_v18  ;;  %v642_v45 = vrot.slane %v4179_v49, 3  ;;  %v3982_v12 = vld [vmem:[%s5377_s1 + $0x168] sm:$0xff]  }
  0x26   :  { %3418 = vmatprep.subr.bf16.mxu1 %v4053_v0 }
  0x27   :  { %3479 = vmatpush3.bf16.msra.mxu0 %v3928_v53  ;;  %v182_v53 = vsel %vm129_vm1, %v172_v32, %v181_v48  ;;  %v236_v54 = vsel %vm129_vm1, %v226_v33, %v235_v50 }
  0x28   :  { %3480 = vmatprep.subr.bf16.mxu0 %v4053_v0 }
  0x29   :  { %3419 = vmatpush3.bf16.msra.mxu1 %v3931_v59  ;;  %v191_v59 = vsel %vm129_vm1, %v181_v48, %v4160_v38  ;;  %v3968_v48 = vld [vmem:[%s5378_s0 + $0x58] ss:$0 sps:$4 sm:$0x77]  }
  0x2a   :  { %3377 = vmatmul.mubr.bf16.gmra.mxu0 %v155_v60  ;;  %3401 = vmatmul.mubr.bf16.gmra.mxu1 %v209_v63  ;;  %v2965_v60 = vcombine.low %v600_v56, %v4100_v5  ;;  %v626_v63 = vrot.slane %v4108_v7, 3  ;;  %v3954_v5 = vld [vmem:[%s5377_s1 + $0xf0] sm:$0xff]  }
  0x2b   :  { %3481 = vmatpush3.bf16.msra.mxu0 %v3932_v61  ;;  %3380 = vmatprep.mubr.msk.bf16.mxu0 %vm4054_vm0, %v4053_v0  ;;  %v3951_v61 = vld [vmem:[%s5377_s1 + $0xf8] sm:$0xff]  }
  0x2c   :  { %3404 = vmatprep.mubr.msk.bf16.mxu1 %vm4054_vm0, %v4053_v0  ;;  %3420 = vmatprep.subr.bf16.mxu1 %v4053_v0  ;;  %v625_v62 = vrot.slane %v2965_v60, 3  ;;  %v629_v8 = vsel %vm624_vm2, %v626_v63, %v628_v3  ;;  %v3972_v60 = vld [vmem:[%s5378_s0 + $0x28] sm:$0xff]  }
  0x2d   :  { %3421 = vmatpush3.bf16.msra.mxu1 %v3935_v6  ;;  %3482 = vmatprep.subr.bf16.mxu0 %v4053_v0  ;;  %v3955_v6 = vld [vmem:[%s5377_s1 + $0x130] sm:$0xff]  }
  0x2e   :  { %3422 = vmatprep.subr.bf16.mxu1 %v4053_v0  ;;  %v627_v38 = vsel %vm624_vm2, %v625_v62, %v626_v63  ;;  %v3971_v63 = vld [vmem:[%s5377_s1 + $0x178] sm:$0xff]  }
  0x2f   :  { %3483 = vmatpush3.bf16.msra.mxu0 %v3936_v10  ;;  %v3957_v10 = vld [vmem:[%s5377_s1 + $0x128] sm:$0xff]  }
  0x30   :  { %3484 = vmatprep.subr.bf16.mxu0 %v4053_v0 }
  0x31   :  { %3423 = vmatpush3.bf16.msra.mxu1 %v3937_v17  ;;  %v3964_v17 = vld [vmem:[%s5377_s1 + $0xc8] sm:$0xff]  }
  0x32   :  { %3381 = vmatmul.mubr.bf16.gmra.mxu0 %v164_v22  ;;  %3405 = vmatmul.mubr.bf16.gmra.mxu1 %v218_v23  ;;  %v3965_v22 = vld [vmem:[%s5377_s1 + $0x108] sm:$0xff]   ;;  %v634_v23 = vrot.slane %v4244_v21, 3 }
  0x33   :  { %3384 = vmatprep.mubr.msk.bf16.mxu0 %vm4054_vm0, %v4053_v0  ;;  %3408 = vmatprep.mubr.msk.bf16.mxu1 %vm4054_vm0, %v4053_v0 }
  0x34   :  { %3424 = vmatprep.subr.bf16.mxu1 %v4053_v0  ;;  %3485 = vmatpush3.bf16.msra.mxu0 %v3941_v26  ;;  %v1173_v26 = vld [vmem:[%s5378_s0 + $0x20] sm:$0xf]  ;;  %v637_v31 = vsel %vm624_vm2, %v634_v23, %v636_v25 }
  0x35   :  { %3425 = vmatpush3.bf16.msra.mxu1 %v3940_v28  ;;  %3486 = vmatprep.subr.bf16.mxu0 %v4053_v0  ;;  %v1564_v28 = vld [vmem:[%s5378_s0 + $0x1c] sm:$0xc] }
  0x36   :  { %3426 = vmatprep.subr.bf16.mxu1 %v4053_v0  ;;  %v3015_v30 = vcombine.low %v1564_v28, %v1173_v26  ;;  %v4559_v28 = vld [vmem:[%s5378_s0 + $0x3c] sm:$0xff]  }
  0x38   :  { %3487 = vmatpush3.bf16.msra.mxu0 %v3943_v36  ;;  %v1589_v32 = vrot.slane %v3015_v30, 2  ;;  %v4439_v36 = vld [vmem:[%s5378_s0 + $0x2c] sm:$0xff]  }
  0x39   :  { %3427 = vmatpush3.bf16.msra.mxu1 %v3942_v37  ;;  %3488 = vmatprep.subr.bf16.mxu0 %v4053_v0  ;;  %v639_v37 = vsel %vm624_vm2, %v636_v25, %v638_v34  ;;  %v1592_v39 = vrot.slane %v4439_v36, 2  ;;  %v3996_v30 = vld [vmem:[%s5377_s1 + $0x150] sm:$0xff]  }
  0x3a   :  { %3385 = vmatmul.mubr.bf16.gmra.mxu0 %v173_v42  ;;  %3409 = vmatmul.mubr.bf16.gmra.mxu1 %v227_v43  ;;  %v4455_v42 = vld [vmem:[%s5378_s0 + $0x34] sm:$0xff]  }
  0x3b   :  { %3388 = vmatprep.mubr.msk.bf16.mxu0 %vm4054_vm0, %v4053_v0  ;;  %3412 = vmatprep.mubr.msk.bf16.mxu1 %vm4054_vm0, %v4053_v0  ;;  %v1594_v44 = vrot.slane %v4455_v42, 2 }
  0x3c   :  { %3428 = vmatprep.subr.bf16.mxu1 %v4053_v0  ;;  %3489 = vmatpush3.bf16.msra.mxu0 %v3948_v46 }
  0x3d   :  { %3429 = vmatpush3.bf16.msra.mxu1 %v3946_v47  ;;  %3490 = vmatprep.subr.bf16.mxu0 %v4053_v0  ;;  %v1172_v47 = vld [vmem:[%s5378_s0 + $0x1c] sm:$0xf] }
  0x3e   :  { %3430 = vmatprep.subr.bf16.mxu1 %v4053_v0 }
  0x40   :  { %3491 = vmatpush3.bf16.msra.mxu0 %v3950_v51  ;;  %v3970_v51 = vld [vmem:[%s5378_s0 + $0x20] sm:$0xff]  }
  0x41   :  { %3431 = vmatpush3.bf16.msra.mxu1 %v3947_v52  ;;  %3596 = vmatprep.subr.bf16.mxu0 %v4053_v0  ;;  %v2995_v52 = vcombine.low %v1172_v47, %v1173_v26  ;;  %v948_v55 = vrot.slane %v3970_v51, 3  ;;  %v4006_v47 = vld [vmem:[%s5377_s1 + $0x140] sm:$0xff]   ;;  %v1306_v51 = vshrl.u32 %v4559_v28, 16 }
  0x42   :  { %3389 = vmatmul.mubr.bf16.gmra.mxu0 %v182_v53  ;;  %3413 = vmatmul.mubr.bf16.gmra.mxu1 %v236_v54  ;;  %v646_v53 = vrot.slane %v3968_v48, 3 }
  0x43   :  { %3392 = vmatprep.mubr.msk.bf16.mxu0 %vm4054_vm0, %v4053_v0  ;;  %3432 = vmatprep.mubr.msk.bf16.mxu1 %vm4054_vm0, %v4053_v0  ;;  %v1273_v56 = vshll.u32 %v2995_v52, 16 }
  0x44   :  { %3536 = vmatprep.subr.bf16.mxu1 %v4053_v0 }
  0x4a   :  { %3393 = vmatmul.mubr.bf16.gmra.mxu0 %v191_v59  ;;  %3433 = vmatmul.mubr.bf16.vlgmr.msra.gmra.mxu1 %v2956_v57 }
  0x4b   :  { %3436 = vmatprep.mubr.msk.bf16.mxu1 %vm4054_vm0, %v4053_v0  ;;  %3492 = vmatprep.mubr.msk.bf16.mxu0 %vm4054_vm0, %v4053_v0 }
  0x4c   :  { %3537 = vmatpush3.bf16.msra.mxu1 %v3951_v61  ;;  %v1275_v61 = vrot.slane %v1273_v56, 1 }
  0x4d   :  { %3538 = vmatprep.subr.bf16.mxu1 %v4053_v0 }
  0x50   :  { %3539 = vmatpush3.bf16.msra.mxu1 %v3954_v5  ;;  %v950_v5 = vrot.slane %v3972_v60, 3 }
  0x51   :  { %3540 = vmatprep.subr.bf16.mxu1 %v4053_v0 }
  0x52   :  { %3437 = vmatmul.mubr.bf16.gmra.mxu1 %v4108_v7  ;;  %3493 = vmatmul.mubr.bf16.vlgmr.msra.gmra.mxu0 %v627_v38  ;;  %v3958_v7 = vld [vmem:[%s5377_s1 + $0xe0] sm:$0xff]   ;;  %v951_v3 = vsel %vm624_vm2, %v948_v55, %v950_v5 }
  0x53   :  { %3597 = vmatpush3.bf16.msra.mxu0 %v3953_v1  ;;  %3440 = vmatprep.mubr.msk.bf16.mxu1 %vm4054_vm0, %v4053_v0 }
  0x54   :  { %3496 = vmatprep.mubr.msk.bf16.mxu0 %vm4054_vm0, %v4053_v0  ;;  %3598 = vmatprep.subr.bf16.mxu0 %v4053_v0 }
  0x55   :  { %3541 = vmatpush3.bf16.msra.mxu1 %v3956_v2  ;;  %v3978_v2 = vld [vmem:[%s5377_s1 + $0x170] sm:$0xff]  }
  0x56   :  { %3542 = vmatprep.subr.bf16.mxu1 %v4053_v0 }
  0x57   :  { %3599 = vmatpush3.bf16.msra.mxu0 %v3955_v6 }
  0x58   :  { %3600 = vmatprep.subr.bf16.mxu0 %v4053_v0 }
  0x59   :  { %3543 = vmatpush3.bf16.msra.mxu1 %v3958_v7  ;;  %v3975_v7 = vld [vmem:[%s5377_s1 + $0x1b8] sm:$0xff]  }
  0x5a   :  { %3441 = vmatmul.mubr.bf16.gmra.mxu1 %v4145_v27  ;;  %3497 = vmatmul.mubr.bf16.gmra.mxu0 %v629_v8  ;;  %v3962_v27 = vld [vmem:[%s5377_s1 + $0xd0] sm:$0xff]  }
  0x5b   :  { %3444 = vmatprep.mubr.msk.bf16.mxu1 %vm4054_vm0, %v4053_v0  ;;  %3500 = vmatprep.mubr.msk.bf16.mxu0 %vm4054_vm0, %v4053_v0  ;;  %v3976_v8 = vld [vmem:[%s5378_s0 + $0x30] sm:$0xff]  }
  0x5c   :  { %3601 = vmatpush3.bf16.msra.mxu0 %v3957_v10  ;;  %3544 = vmatprep.subr.bf16.mxu1 %v4053_v0 }
  0x5d   :  { %3602 = vmatprep.subr.bf16.mxu0 %v4053_v0  ;;  %3545 = vmatpush3.bf16.msra.mxu1 %v3960_v11  ;;  %v1286_v11 = vshll.u32 %v4439_v36, 16 }
  0x5e   :  { %3546 = vmatprep.subr.bf16.mxu1 %v4053_v0 }
  0x60   :  { %3603 = vmatpush3.bf16.msra.mxu0 %v3959_v14  ;;  %v952_v14 = vrot.slane %v3976_v8, 3 }
  0x61   :  { %3604 = vmatprep.subr.bf16.mxu0 %v4053_v0  ;;  %3547 = vmatpush3.bf16.msra.mxu1 %v3962_v27 }
  0x62   :  { %3445 = vmatmul.mubr.bf16.gmra.mxu1 %v4168_v41  ;;  %3501 = vmatmul.mubr.bf16.gmra.mxu0 %v631_v16  ;;  %v3966_v41 = vld [vmem:[%s5377_s1 + $0xc0] sm:$0xff]   ;;  %v3979_v16 = vld [vmem:[%s5377_s1 + $0x1b0] sm:$0xff]  }
  0x63   :  { %3448 = vmatprep.mubr.msk.bf16.mxu1 %vm4054_vm0, %v4053_v0  ;;  %3504 = vmatprep.mubr.msk.bf16.mxu0 %vm4054_vm0, %v4053_v0 }
  0x64   :  { %3605 = vmatpush3.bf16.msra.mxu0 %v3961_v15  ;;  %3548 = vmatprep.subr.bf16.mxu1 %v4053_v0  ;;  %v1288_v15 = vrot.slane %v1286_v11, 1 }
  0x65   :  { %3606 = vmatprep.subr.bf16.mxu0 %v4053_v0  ;;  %3549 = vmatpush3.bf16.msra.mxu1 %v3964_v17  ;;  %v3988_v17 = vld [vmem:[%s5377_s1 + $0x160] sm:$0xff]  }
  0x66   :  { %3550 = vmatprep.subr.bf16.mxu1 %v4053_v0 }
  0x68   :  { %3607 = vmatpush3.bf16.msra.mxu0 %v3963_v19 }
  0x69   :  { %3608 = vmatprep.subr.bf16.mxu0 %v4053_v0  ;;  %3551 = vmatpush3.bf16.msra.mxu1 %v3966_v41  ;;  %v3980_v41 = vld [vmem:[%s5378_s0 + $0x38] sm:$0xff]  }
  0x6a   :  { %3449 = vmatmul.mubr.bf16.gmra.mxu1 %v4201_v58  ;;  %3505 = vmatmul.mubr.bf16.gmra.mxu0 %v633_v20  ;;  %v635_v58 = vsel %vm624_vm2, %v632_v18, %v634_v23  ;;  %v953_v18 = vsel %vm624_vm2, %v950_v5, %v952_v14  ;;  %v1290_v20 = vshrl.u32 %v4439_v36, 16  ;;  %v3983_v23 = vld [vmem:[%s5377_s1 + $0x1a8] sm:$0xff]   ;;  %v1302_v36 = vshll.u32 %v4559_v28, 16 }
  0x6b   :  { %3452 = vmatprep.mubr.msk.bf16.mxu1 %vm4054_vm0, %v4053_v0  ;;  %3508 = vmatprep.mubr.msk.bf16.mxu0 %vm4054_vm0, %v4053_v0 }
  0x6c   :  { %3609 = vmatpush3.bf16.msra.mxu0 %v3965_v22  ;;  %3656 = vmatprep.subr.bf16.mxu1 %v4053_v0  ;;  %v1294_v22 = vshll.u32 %v4455_v42, 16  ;;  %v1292_v25 = vor.u32 %v1290_v20, %v1288_v15 }
  0x6d   :  { %3610 = vmatprep.subr.bf16.mxu0 %v4053_v0 }
  0x6e   :  { %v1296_v26 = vrot.slane %v1294_v22, 1 }
  0x70   :  { %3611 = vmatpush3.bf16.msra.mxu0 %v3967_v24  ;;  %v3992_v24 = vld [vmem:[%s5377_s1 + $0x158] sm:$0xff]  }
  0x71   :  { %3716 = vmatprep.subr.bf16.mxu0 %v4053_v0 }
  0x72   :  { %3453 = vmatmul.mubr.bf16.gmra.mxu1 %v4244_v21  ;;  %3509 = vmatmul.mubr.bf16.gmra.mxu0 %v635_v58  ;;  %v4423_v21 = vld [vmem:[%s5378_s0 + $0x24] sm:$0xff]   ;;  %v954_v58 = vrot.slane %v3980_v41, 3 }
  0x73   :  { %3456 = vmatprep.mubr.msk.bf16.mxu1 %vm4054_vm0, %v4053_v0  ;;  %3512 = vmatprep.mubr.msk.bf16.mxu0 %vm4054_vm0, %v4053_v0  ;;  %v1590_v33 = vrot.slane %v4423_v21, 2  ;;  %v1278_v62 = vshll.u32 %v4423_v21, 16  ;;  %v1282_v10 = vshrl.u32 %v4423_v21, 16  ;;  %v3989_v21 = vld [vmem:[%s5377_s1 + $0x1a0] sm:$0xff]  }
  0x75   :  { %v4429_v35 = vsel %vm1588_vm3, %v1589_v32, %v1590_v33  ;;  %v4444_v40 = vsel %vm1588_vm3, %v1590_v33, %v1592_v39  ;;  %v1280_v1 = vrot.slane %v1278_v62, 1  ;;  %v1297_v32 = vsel %vm1269_vm4, %v1292_v25, %v1296_v26  ;;  %v3984_v33 = vld [vmem:[%s5378_s0 + $0x40] sm:$0xff]   ;;  %v4000_v25 = vld [vmem:[%s5378_s0 + $0x68] sm:$0xff]  }
  0x77   :  { %v1284_v27 = vor.u32 %v1282_v10, %v1280_v1 }
  0x79   :  { %v1289_v19 = vsel %vm1269_vm4, %v1284_v27, %v1288_v15  ;;  %v4658_v27 = vld [vmem:[%s5378_s0 + $0x5c] sm:$0xff]  }
  0x7a   :  { %3457 = vmatmul.mubr.bf16.gmra.mxu1 %v4116_v9  ;;  %3513 = vmatmul.mubr.bf16.gmra.mxu0 %v637_v31  ;;  %v640_v9 = vrot.slane %v4150_v29, 3  ;;  %v955_v31 = vsel %vm624_vm2, %v952_v14, %v954_v58 }
  0x7b   :  { %3460 = vmatprep.mubr.msk.bf16.mxu1 %vm4054_vm0, %v4053_v0  ;;  %3516 = vmatprep.mubr.msk.bf16.mxu0 %vm4054_vm0, %v4053_v0 }
  0x7c   :  { %v641_v43 = vsel %vm624_vm2, %v638_v34, %v640_v9  ;;  %v643_v46 = vsel %vm624_vm2, %v640_v9, %v642_v45  ;;  %v1298_v34 = vshrl.u32 %v4455_v42, 16  ;;  %v956_v9 = vrot.slane %v3984_v33, 3  ;;  %v4033_v42 = vld [vmem:[%s5377_s1 + $0x1c8] sm:$0xff]  }
  0x7e   :  { %v957_v48 = vsel %vm624_vm2, %v954_v58, %v956_v9 }
  0x82   :  { %3461 = vmatmul.mubr.bf16.gmra.mxu1 %v4126_v13  ;;  %3517 = vmatmul.mubr.bf16.gmra.mxu0 %v639_v37  ;;  %v4462_v13 = vsel %vm1588_vm3, %v1592_v39, %v1594_v44  ;;  %v3993_v37 = vld [vmem:[%s5377_s1 + $0x198] sm:$0xff]   ;;  %v4002_v39 = vld [vmem:[%s5377_s1 + $0x148] sm:$0xff]  }
  0x83   :  { %3464 = vmatprep.mubr.msk.bf16.mxu1 %vm4054_vm0, %v4053_v0  ;;  %3520 = vmatprep.mubr.msk.bf16.mxu0 %vm4054_vm0, %v4053_v0 }
  0x8a   :  { %3465 = vmatmul.mubr.bf16.gmra.mxu1 %v4150_v29  ;;  %3521 = vmatmul.mubr.bf16.gmra.mxu0 %v641_v43  ;;  %v644_v29 = vrot.slane %v4215_v4, 3  ;;  %v1300_v43 = vor.u32 %v1298_v34, %v1296_v26  ;;  %v1338_v26 = vshrl.u32 %v4658_v27, 16 }
  0x8b   :  { %3468 = vmatprep.mubr.msk.bf16.mxu1 %vm4054_vm0, %v4053_v0  ;;  %3524 = vmatprep.mubr.msk.bf16.mxu0 %vm4054_vm0, %v4053_v0 }
  0x8c   :  { %v645_v50 = vsel %vm624_vm2, %v642_v45, %v644_v29  ;;  %v647_v57 = vsel %vm624_vm2, %v644_v29, %v646_v53  ;;  %v1304_v45 = vrot.slane %v1302_v36, 1  ;;  %v3999_v29 = vld [vmem:[%s5377_s1 + $0x190] sm:$0xff]   ;;  %v4003_v53 = vld [vmem:[%s5377_s1 + $0x188] sm:$0xff]  }
  0x8d   :  { %v4694_v36 = vld [vmem:[%s5378_s0 + $0x6c] sm:$0xff]  }
  0x92   :  { %3469 = vmatmul.mubr.bf16.gmra.mxu1 %v4179_v49  ;;  %3525 = vmatmul.mubr.bf16.gmra.mxu0 %v643_v46  ;;  %v3969_v49 = vld [vmem:[%s5378_s0 + $0x18] sm:$0xf8]   ;;  %v4591_v46 = vld [vmem:[%s5378_s0 + $0x44] sm:$0xff]  }
  0x93   :  { %3472 = vmatprep.mubr.msk.bf16.mxu1 %vm4054_vm0, %v4053_v0  ;;  %3528 = vmatprep.mubr.msk.bf16.mxu0 %vm4054_vm0, %v4053_v0  ;;  %v947_v54 = vrot.slane %v3969_v49, 3  ;;  %v3986_v49 = vld [vmem:[%s5378_s0 + $0x48] sm:$0xff]   ;;  %v1314_v62 = vshrl.u32 %v4591_v46, 16 }
  0x95   :  { %v949_v59 = vsel %vm624_vm2, %v947_v54, %v948_v55  ;;  %v958_v54 = vrot.slane %v3986_v49, 3  ;;  %v1308_v55 = vor.u32 %v1306_v51, %v1304_v45 }
  0x97   :  { %v959_v60 = vsel %vm624_vm2, %v956_v9, %v958_v54 }
  0x9a   :  { %3473 = vmatmul.mubr.bf16.gmra.mxu1 %v4215_v4  ;;  %3529 = vmatmul.mubr.bf16.gmra.mxu0 %v645_v50  ;;  %v1271_v4 = vshrl.u32 %v2995_v52, 16  ;;  %v1305_v50 = vsel %vm1269_vm4, %v1300_v43, %v1304_v45  ;;  %v1310_v52 = vshll.u32 %v4591_v46, 16 }
  0x9b   :  { %3532 = vmatprep.mubr.msk.bf16.mxu0 %vm4054_vm0, %v4053_v0  ;;  %3552 = vmatprep.mubr.msk.bf16.mxu1 %vm4054_vm0, %v4053_v0 }
  0x9c   :  { %v1276_v38 = vor.u32 %v1275_v61, %v1271_v4  ;;  %v1312_v56 = vrot.slane %v1310_v52, 1  ;;  %v3990_v61 = vld [vmem:[%s5378_s0 + $0x50] sm:$0xff]  }
  0x9d   :  { %v960_v5 = vrot.slane %v3990_v61, 3 }
  0x9e   :  { %v1281_v6 = vsel %vm1269_vm4, %v1276_v38, %v1280_v1  ;;  %v1313_v4 = vsel %vm1269_vm4, %v1308_v55, %v1312_v56  ;;  %v1316_v38 = vor.u32 %v1314_v62, %v1312_v56 }
  0xa2   :  { %3533 = vmatmul.mubr.bf16.gmra.mxu0 %v647_v57  ;;  %3553 = vmatmul.mubr.bf16.vlgmr.msra.gmra.mxu1 %v949_v59  ;;  %v4620_v57 = vld [vmem:[%s5378_s0 + $0x4c] sm:$0xff]   ;;  %v4007_v59 = vld [vmem:[%s5377_s1 + $0x180] sm:$0xff]  }
  0xa3   :  { %3556 = vmatprep.mubr.msk.bf16.mxu1 %vm4054_vm0, %v4053_v0  ;;  %3612 = vmatprep.mubr.msk.bf16.mxu0 %vm4054_vm0, %v4053_v0  ;;  %v1322_v8 = vshrl.u32 %v4620_v57, 16 }
  0xa4   :  { %3657 = vmatpush3.bf16.msra.mxu1 %v3971_v63  ;;  %v1318_v63 = vshll.u32 %v4620_v57, 16 }
  0xa5   :  { %3658 = vmatprep.subr.bf16.mxu1 %v4053_v0 }
  0xa6   :  { %v1320_v1 = vrot.slane %v1318_v63, 1 }
  0xa8   :  { %3659 = vmatpush3.bf16.msra.mxu1 %v3978_v2  ;;  %v4642_v2 = vld [vmem:[%s5378_s0 + $0x54] sm:$0xff]  }
  0xa9   :  { %3660 = vmatprep.subr.bf16.mxu1 %v4053_v0  ;;  %v1326_v10 = vshll.u32 %v4642_v2, 16 }
  0xaa   :  { %3557 = vmatmul.mubr.bf16.gmra.mxu1 %v951_v3  ;;  %3613 = vmatmul.mubr.bf16.vlgmr.msra.gmra.mxu0 %v1281_v6  ;;  %v961_v3 = vsel %vm624_vm2, %v958_v54, %v960_v5  ;;  %v1321_v6 = vsel %vm1269_vm4, %v1316_v38, %v1320_v1  ;;  %v1354_v38 = vshrl.u32 %v4694_v36, 16 }
  0xab   :  { %3717 = vmatpush3.bf16.msra.mxu0 %v3975_v7  ;;  %3560 = vmatprep.mubr.msk.bf16.mxu1 %vm4054_vm0, %v4053_v0  ;;  %v3994_v7 = vld [vmem:[%s5378_s0 + $0x58] sm:$0xff]   ;;  %v1328_v14 = vrot.slane %v1326_v10, 1 }
  0xac   :  { %3616 = vmatprep.mubr.msk.bf16.mxu0 %vm4054_vm0, %v4053_v0  ;;  %3718 = vmatprep.subr.bf16.mxu0 %v4053_v0  ;;  %v962_v11 = vrot.slane %v3994_v7, 3 }
  0xad   :  { %3661 = vmatpush3.bf16.msra.mxu1 %v3982_v12  ;;  %v1324_v12 = vor.u32 %v1322_v8, %v1320_v1 }
  0xae   :  { %3662 = vmatprep.subr.bf16.mxu1 %v4053_v0  ;;  %v963_v15 = vsel %vm624_vm2, %v960_v5, %v962_v11 }
  0xaf   :  { %3719 = vmatpush3.bf16.msra.mxu0 %v3979_v16  ;;  %v1329_v16 = vsel %vm1269_vm4, %v1324_v12, %v1328_v14 }
  0xb0   :  { %3720 = vmatprep.subr.bf16.mxu0 %v4053_v0 }
  0xb1   :  { %3663 = vmatpush3.bf16.msra.mxu1 %v3988_v17  ;;  %v3997_v17 = vld [vmem:[%s5378_s0 + $0x60] sm:$0xff]  }
  0xb2   :  { %3561 = vmatmul.mubr.bf16.gmra.mxu1 %v953_v18  ;;  %3617 = vmatmul.mubr.bf16.gmra.mxu0 %v1289_v19  ;;  %v1330_v18 = vshrl.u32 %v4642_v2, 16  ;;  %v1334_v19 = vshll.u32 %v4658_v27, 16  ;;  %v964_v41 = vrot.slane %v3997_v17, 3 }
  0xb3   :  { %3564 = vmatprep.mubr.msk.bf16.mxu1 %vm4054_vm0, %v4053_v0  ;;  %3620 = vmatprep.mubr.msk.bf16.mxu0 %vm4054_vm0, %v4053_v0 }
  0xb4   :  { %3721 = vmatpush3.bf16.msra.mxu0 %v3983_v23  ;;  %3664 = vmatprep.subr.bf16.mxu1 %v4053_v0  ;;  %v1332_v20 = vor.u32 %v1330_v18, %v1328_v14  ;;  %v1336_v22 = vrot.slane %v1334_v19, 1  ;;  %v4674_v23 = vld [vmem:[%s5378_s0 + $0x64] sm:$0xff]  }
  0xb5   :  { %3722 = vmatprep.subr.bf16.mxu0 %v4053_v0  ;;  %3665 = vmatpush3.bf16.msra.mxu1 %v3992_v24  ;;  %v965_v24 = vsel %vm624_vm2, %v962_v11, %v964_v41 }
  0xb6   :  { %3666 = vmatprep.subr.bf16.mxu1 %v4053_v0  ;;  %v1337_v58 = vsel %vm1269_vm4, %v1332_v20, %v1336_v22  ;;  %v1340_v33 = vor.u32 %v1338_v26, %v1336_v22  ;;  %v4750_v20 = vld [vmem:[%s5378_s0 + $0x3c] sm:$0xff]  }
  0xb8   :  { %3723 = vmatpush3.bf16.msra.mxu0 %v3989_v21  ;;  %v1342_v21 = vshll.u32 %v4674_v23, 16 }
  0xb9   :  { %3724 = vmatprep.subr.bf16.mxu0 %v4053_v0  ;;  %3667 = vmatpush3.bf16.msra.mxu1 %v3996_v30 }
  0xba   :  { %3565 = vmatmul.mubr.bf16.gmra.mxu1 %v955_v31  ;;  %3621 = vmatmul.mubr.bf16.gmra.mxu0 %v1297_v32  ;;  %v966_v32 = vrot.slane %v4000_v25, 3  ;;  %v1344_v34 = vrot.slane %v1342_v21, 1 }
  0xbb   :  { %3568 = vmatprep.mubr.msk.bf16.mxu1 %vm4054_vm0, %v4053_v0  ;;  %3624 = vmatprep.mubr.msk.bf16.mxu0 %vm4054_vm0, %v4053_v0 }
  0xbc   :  { %3725 = vmatpush3.bf16.msra.mxu0 %v3993_v37  ;;  %3668 = vmatprep.subr.bf16.mxu1 %v4053_v0  ;;  %v967_v45 = vsel %vm624_vm2, %v964_v41, %v966_v32 }
  0xbd   :  { %3726 = vmatprep.subr.bf16.mxu0 %v4053_v0  ;;  %3669 = vmatpush3.bf16.msra.mxu1 %v4002_v39 }
  0xbe   :  { %3670 = vmatprep.subr.bf16.mxu1 %v4053_v0 }
  0xc0   :  { %3727 = vmatpush3.bf16.msra.mxu0 %v3999_v29  ;;  %v1345_v29 = vsel %vm1269_vm4, %v1340_v33, %v1344_v34 }
  0xc1   :  { %3728 = vmatprep.subr.bf16.mxu0 %v4053_v0  ;;  %3671 = vmatpush3.bf16.msra.mxu1 %v4006_v47  ;;  %v4004_v47 = vld [vmem:[%s5378_s0 + $0x70] ss:$0 sps:$4 sm:$0x77]  }
  0xc2   :  { %3569 = vmatmul.mubr.bf16.gmra.mxu1 %v957_v48  ;;  %3625 = vmatmul.mubr.bf16.gmra.mxu0 %v1305_v50  ;;  %v1346_v48 = vshrl.u32 %v4674_v23, 16  ;;  %v1350_v50 = vshll.u32 %v4694_v36, 16  ;;  %v968_v54 = vrot.slane %v4004_v47, 3  ;;  %v4780_v47 = vld [vmem:[%s5378_s0 + $0x44] sm:$0xff]  }
  0xc3   :  { %3572 = vmatprep.mubr.msk.bf16.mxu1 %vm4054_vm0, %v4053_v0  ;;  %3628 = vmatprep.mubr.msk.bf16.mxu0 %vm4054_vm0, %v4053_v0 }
  0xc4   :  { %3729 = vmatpush3.bf16.msra.mxu0 %v4003_v53  ;;  %3776 = vmatprep.subr.bf16.mxu1 %v4053_v0  ;;  %v1348_v55 = vor.u32 %v1346_v48, %v1344_v34  ;;  %v1352_v56 = vrot.slane %v1350_v50, 1  ;;  %v969_v63 = vsel %vm624_vm2, %v966_v32, %v968_v54  ;;  %v1912_v32 = vrot.slane %v4750_v20, 2 }
  0xc5   :  { %3730 = vmatprep.subr.bf16.mxu0 %v4053_v0 }
  0xc6   :  { %v1353_v5 = vsel %vm1269_vm4, %v1348_v55, %v1352_v56  ;;  %v1356_v10 = vor.u32 %v1354_v38, %v1352_v56  ;;  %v1914_v55 = vrot.slane %v4780_v47, 2  ;;  %v4017_v56 = vld [vmem:[%s5377_s1 + $0x230] sm:$0xff]  }
  0xc7   :  { %v4812_v38 = vld [vmem:[%s5378_s0 + $0x4c] sm:$0xff]  }
  0xc8   :  { %3731 = vmatpush3.bf16.msra.mxu0 %v4007_v59  ;;  %v4008_v59 = vld [vmem:[%s5378_s0 + $0x74] ss:$0 sps:$4 sm:$0x11]  }
  0xc9   :  { %3836 = vmatprep.subr.bf16.mxu0 %v4053_v0  ;;  %v1358_v1 = vshll.u32 %v4008_v59, 16 }
  0xca   :  { %3573 = vmatmul.mubr.bf16.gmra.mxu1 %v959_v60  ;;  %3629 = vmatmul.mubr.bf16.gmra.mxu0 %v1313_v4 }
  0xcb   :  { %3576 = vmatprep.mubr.msk.bf16.mxu1 %vm4054_vm0, %v4053_v0  ;;  %3632 = vmatprep.mubr.msk.bf16.mxu0 %vm4054_vm0, %v4053_v0  ;;  %v1360_v11 = vrot.slane %v1358_v1, 1 }
  0xcd   :  { %v1361_v19 = vsel %vm1269_vm4, %v1356_v10, %v1360_v11  ;;  %v4026_v10 = vld [vmem:[%s5377_s1 + $0x1d8] sm:$0xff]  }
  0xd2   :  { %3577 = vmatmul.mubr.bf16.gmra.mxu1 %v961_v3  ;;  %3633 = vmatmul.mubr.bf16.gmra.mxu0 %v1321_v6 }
  0xd3   :  { %3580 = vmatprep.mubr.msk.bf16.mxu1 %vm4054_vm0, %v4053_v0  ;;  %3636 = vmatprep.mubr.msk.bf16.mxu0 %vm4054_vm0, %v4053_v0 }
  0xda   :  { %3581 = vmatmul.mubr.bf16.gmra.mxu1 %v963_v15  ;;  %3637 = vmatmul.mubr.bf16.gmra.mxu0 %v1329_v16  ;;  %v1814_v15 = vld [vmem:[%s5378_s0 + $0x34] sm:$0xc]  ;;  %v4739_v16 = vld [vmem:[%s5378_s0 + $0x38] sm:$0xf] }
  0xdb   :  { %3584 = vmatprep.mubr.msk.bf16.mxu1 %vm4054_vm0, %v4053_v0  ;;  %3640 = vmatprep.mubr.msk.bf16.mxu0 %vm4054_vm0, %v4053_v0  ;;  %v3025_v41 = vcombine.low %v1814_v15, %v4739_v16  ;;  %v1596_v15 = vrot.slane %v4559_v28, 2 }
  0xdd   :  { %v1911_v21 = vrot.slane %v3025_v41, 2 }
  0xe2   :  { %v4683_v30 = vpop.f32.mrf.mxu0  ;;  %v4685_v31 = vpop.f32.mrf.mxu1  ;;  %3585 = vmatmul.mubr.bf16.gmra.mxu1 %v965_v24  ;;  %3641 = vmatmul.mubr.bf16.gmra.mxu0 %v1337_v58  ;;  %v4010_v58 = vld [vmem:[%s5377_s1 + $0x1f8] sm:$0xff]  }
  0xe3   :  { %3588 = vmatprep.mubr.msk.bf16.mxu1 %vm4054_vm0, %v4053_v0  ;;  %3644 = vmatprep.mubr.msk.bf16.mxu0 %vm4054_vm0, %v4053_v0 }
  0xe4   :  { %v3374_v37 = vpop.f32.mrf.mxu0  ;;  %v3398_v39 = vpop.f32.mrf.mxu1 }
  0xe5   :  { %v4016_v37 = vld [vmem:[%s5377_s1 + $0x1f0] sm:$0xff]  }
  0xe6   :  { %v4696_v9 = vpop.f32.mrf.mxu0  ;;  %v4698_v43 = vpop.f32.mrf.mxu1 }
  0xe8   :  { %v3375_v49 = vpop.f32.mrf.mxu0  ;;  %v3399_v51 = vpop.f32.mrf.mxu1 }
  0xe9   :  { %v4019_v49 = vld [vmem:[%s5377_s1 + $0x1e8] sm:$0xff]  }
  0xea   :  { %v4707_v52 = vpop.f32.mrf.mxu0  ;;  %v4709_v53 = vpop.f32.mrf.mxu1  ;;  %3589 = vmatmul.mubr.bf16.gmra.mxu1 %v967_v45  ;;  %3645 = vmatmul.mubr.bf16.gmra.mxu0 %v1345_v29  ;;  %v1913_v45 = vsel %vm1588_vm3, %v1911_v21, %v1912_v32  ;;  %v4014_v29 = vld [vmem:[%s5377_s1 + $0x238] sm:$0xff]   ;;  %v1597_v21 = vsel %vm1588_vm3, %v1594_v44, %v1596_v15 }
  0xeb   :  { %3592 = vmatprep.mubr.msk.bf16.mxu1 %vm4054_vm0, %v4053_v0  ;;  %3648 = vmatprep.mubr.msk.bf16.mxu0 %vm4054_vm0, %v4053_v0 }
  0xec   :  { %v3378_v60 = vpop.f32.mrf.mxu0  ;;  %v3402_v4 = vpop.f32.mrf.mxu1 }
  0xee   :  { %v4718_v61 = vpop.f32.mrf.mxu0  ;;  %v4720_v62 = vpop.f32.mrf.mxu1 }
  0xf0   :  { %v3379_v3 = vpop.f32.mrf.mxu0  ;;  %v3403_v6 = vpop.f32.mrf.mxu1 }
  0xf1   :  { %v4020_v6 = vld [vmem:[%s5377_s1 + $0x228] sm:$0xff]  }
  0xf2   :  { %v4725_v7 = vpop.f32.mrf.mxu0  ;;  %v4727_v8 = vpop.f32.mrf.mxu1  ;;  %3593 = vmatmul.mubr.bf16.gmra.mxu1 %v969_v63  ;;  %3649 = vmatmul.mubr.bf16.gmra.mxu0 %v1353_v5  ;;  %v1915_v5 = vsel %vm1588_vm3, %v1912_v32, %v1914_v55 }
  0xf3   :  { %3652 = vmatprep.mubr.msk.bf16.mxu0 %vm4054_vm0, %v4053_v0  ;;  %3672 = vmatprep.mubr.msk.bf16.mxu1 %vm4054_vm0, %v4053_v0 }
  0xf4   :  { %v3382_v12 = vpop.f32.mrf.mxu0  ;;  %v3406_v14 = vpop.f32.mrf.mxu1 }
  0xf6   :  { %v4741_v17 = vpop.f32.mrf.mxu0  ;;  %v4743_v18 = vpop.f32.mrf.mxu1 }
  0xf8   :  { %v3383_v22 = vpop.f32.mrf.mxu0  ;;  %v3407_v24 = vpop.f32.mrf.mxu1 }
  0xfa   :  { %v4755_v25 = vpop.f32.mrf.mxu0  ;;  %v4757_v26 = vpop.f32.mrf.mxu1  ;;  %3653 = vmatmul.mubr.bf16.gmra.mxu0 %v1361_v19  ;;  %3673 = vmatmul.mubr.bf16.vlgmr.msra.gmra.mxu1 %v4429_v35  ;;  %v1916_v19 = vrot.slane %v4812_v38, 2 }
  0xfb   :  { %3676 = vmatprep.mubr.msk.bf16.mxu1 %vm4054_vm0, %v4053_v0  ;;  %3732 = vmatprep.mubr.msk.bf16.mxu0 %vm4054_vm0, %v4053_v0 }
  0xfc   :  { %v3386_v33 = vpop.f32.mrf.mxu0  ;;  %v3410_v34 = vpop.f32.mrf.mxu1  ;;  %3777 = vmatpush3.bf16.msra.mxu1 %v4010_v58  ;;  %v1917_v32 = vsel %vm1588_vm3, %v1914_v55, %v1916_v19 }
  0xfd   :  { %3778 = vmatprep.subr.bf16.mxu1 %v4053_v0  ;;  %v4850_v33 = vld [vmem:[%s5378_s0 + $0x54] sm:$0xff]  }
  0xfe   :  { %v4769_v39 = vpop.f32.mrf.mxu0  ;;  %v4771_v35 = vpop.f32.mrf.mxu1 }
 0x100   :  { %v3387_v48 = vpop.f32.mrf.mxu0  ;;  %v3411_v50 = vpop.f32.mrf.mxu1  ;;  %3779 = vmatpush3.bf16.msra.mxu1 %v4016_v37 }
 0x101   :  { %3780 = vmatprep.subr.bf16.mxu1 %v4053_v0  ;;  %v1598_v50 = vrot.slane %v4591_v46, 2 }
 0x102   :  { %v4786_v51 = vpop.f32.mrf.mxu0  ;;  %v4788_v54 = vpop.f32.mrf.mxu1  ;;  %3677 = vmatmul.mubr.bf16.gmra.mxu1 %v4444_v40  ;;  %3733 = vmatmul.mubr.bf16.vlgmr.msra.gmra.mxu0 %v1913_v45  ;;  %v4023_v40 = vld [vmem:[%s5377_s1 + $0x1e0] sm:$0xff]   ;;  %v4027_v45 = vld [vmem:[%s5377_s1 + $0x218] sm:$0xff]  }
 0x103   :  { %3837 = vmatpush3.bf16.msra.mxu0 %v4014_v29  ;;  %3680 = vmatprep.mubr.msk.bf16.mxu1 %vm4054_vm0, %v4053_v0 }
 0x104   :  { %v3390_v59 = vpop.f32.mrf.mxu0  ;;  %v3414_v60 = vpop.f32.mrf.mxu1  ;;  %3736 = vmatprep.mubr.msk.bf16.mxu0 %vm4054_vm0, %v4053_v0  ;;  %3838 = vmatprep.subr.bf16.mxu0 %v4053_v0 }
 0x105   :  { %3781 = vmatpush3.bf16.msra.mxu1 %v4019_v49  ;;  %v1918_v49 = vrot.slane %v4850_v33, 2  ;;  %v4031_v59 = vld [vmem:[%s5377_s1 + $0x210] sm:$0xff]  }
 0x106   :  { %v4803_v4 = vpop.f32.mrf.mxu0  ;;  %v4805_v63 = vpop.f32.mrf.mxu1  ;;  %3782 = vmatprep.subr.bf16.mxu1 %v4053_v0 }
 0x107   :  { %3839 = vmatpush3.bf16.msra.mxu0 %v4017_v56 }
 0x108   :  { %v3391_v1 = vpop.f32.mrf.mxu0  ;;  %v3415_v3 = vpop.f32.mrf.mxu1  ;;  %3840 = vmatprep.subr.bf16.mxu0 %v4053_v0 }
 0x109   :  { %3783 = vmatpush3.bf16.msra.mxu1 %v4023_v40  ;;  %v1599_v1 = vsel %vm1588_vm3, %v1596_v15, %v1598_v50  ;;  %v1919_v3 = vsel %vm1588_vm3, %v1916_v19, %v1918_v49 }
 0x10a   :  { %v4821_v11 = vpop.f32.mrf.mxu0  ;;  %v513_v12 = vpop.f32.mrf.mxu1  ;;  %3681 = vmatmul.mubr.bf16.gmra.mxu1 %v4462_v13  ;;  %3737 = vmatmul.mubr.bf16.gmra.mxu0 %v1915_v5  ;;  %v4024_v13 = vld [vmem:[%s5377_s1 + $0x220] sm:$0xff]  }
 0x10b   :  { %v514_v14 = vadd.f32 %v513_v12, %v4683_v30  ;;  %3684 = vmatprep.mubr.msk.bf16.mxu1 %vm4054_vm0, %v4053_v0  ;;  %3740 = vmatprep.mubr.msk.bf16.mxu0 %vm4054_vm0, %v4053_v0  ;;  %v4029_v30 = vld [vmem:[%s5377_s1 + $0x1d0] sm:$0xff]  }
 0x10c   :  { %v3394_v41 = vpop.f32.mrf.mxu0  ;;  %v3434_v22 = vpop.f32.mrf.mxu1  ;;  %3841 = vmatpush3.bf16.msra.mxu0 %v4020_v6  ;;  %3784 = vmatprep.subr.bf16.mxu1 %v4053_v0  ;;  %v4885_v6 = vld [vmem:[%s5378_s0 + $0x5c] sm:$0xff]  }
 0x10d   :  { %3842 = vmatprep.subr.bf16.mxu0 %v4053_v0  ;;  %3785 = vmatpush3.bf16.msra.mxu1 %v4026_v10  ;;  %v1600_v22 = vrot.slane %v4620_v57, 2 }
 0x10e   :  { %v4839_v24 = vpop.f32.mrf.mxu0  ;;  %v516_v28 = vpop.f32.mrf.mxu1  ;;  %3786 = vmatprep.subr.bf16.mxu1 %v4053_v0 }
 0x10f   :  { %v517_v58 = vadd.f32 %v516_v28, %v4696_v9 }
 0x110   :  { %v3395_v34 = vpop.f32.mrf.mxu0  ;;  %v3435_v37 = vpop.f32.mrf.mxu1  ;;  %3843 = vmatpush3.bf16.msra.mxu0 %v4024_v13  ;;  %v1920_v13 = vrot.slane %v4885_v6, 2 }
 0x111   :  { %3844 = vmatprep.subr.bf16.mxu0 %v4053_v0  ;;  %3787 = vmatpush3.bf16.msra.mxu1 %v4029_v30  ;;  %v1601_v37 = vsel %vm1588_vm3, %v1598_v50, %v1600_v22  ;;  %v1602_v50 = vrot.slane %v4642_v2, 2 }
 0x112   :  { %v521_v44 = vpop.f32.mrf.mxu1  ;;  %v741_v9 = vpop.f32.mrf.mxu0  ;;  %3685 = vmatmul.mubr.bf16.gmra.mxu1 %v1597_v21  ;;  %3741 = vmatmul.mubr.bf16.gmra.mxu0 %v1917_v32  ;;  %v1921_v57 = vsel %vm1588_vm3, %v1918_v49, %v1920_v13 }
 0x113   :  { %v522_v29 = vadd.f32 %v521_v44, %v4707_v52  ;;  %v4860_v48 = vadd.f32 %v741_v9, %v514_v14  ;;  %3688 = vmatprep.mubr.msk.bf16.mxu1 %vm4054_vm0, %v4053_v0  ;;  %3744 = vmatprep.mubr.msk.bf16.mxu0 %vm4054_vm0, %v4053_v0  ;;  %v4037_v52 = vld [vmem:[%s5377_s1 + $0x1c0] sm:$0xff]   ;;  %v4034_v14 = vld [vmem:[%s5377_s1 + $0x208] sm:$0xff]  }
 0x114   :  { %v3438_v55 = vpop.f32.mrf.mxu1  ;;  %v3494_v56 = vpop.f32.mrf.mxu0  ;;  %3845 = vmatpush3.bf16.msra.mxu0 %v4027_v45  ;;  %3788 = vmatprep.subr.bf16.mxu1 %v4053_v0  ;;  %v4912_v45 = vld [vmem:[%s5378_s0 + $0x64] sm:$0xff]  }
 0x115   :  { %3846 = vmatprep.subr.bf16.mxu0 %v4053_v0  ;;  %3789 = vmatpush3.bf16.msra.mxu1 %v4033_v42  ;;  %v1922_v49 = vrot.slane %v4912_v45, 2 }
 0x116   :  { %v524_v60 = vpop.f32.mrf.mxu1  ;;  %v744_v46 = vpop.f32.mrf.mxu0  ;;  %3790 = vmatprep.subr.bf16.mxu1 %v4053_v0 }
 0x117   :  { %v525_v40 = vadd.f32 %v524_v60, %v4718_v61  ;;  %v4878_v5 = vadd.f32 %v744_v46, %v517_v58  ;;  %v4038_v58 = vld [vmem:[%s5377_s1 + $0x200] sm:$0xff]  }
 0x118   :  { %v3439_v10 = vpop.f32.mrf.mxu1  ;;  %v3495_v12 = vpop.f32.mrf.mxu0  ;;  %3847 = vmatpush3.bf16.msra.mxu0 %v4031_v59 }
 0x119   :  { %3848 = vmatprep.subr.bf16.mxu0 %v4053_v0  ;;  %3791 = vmatpush3.bf16.msra.mxu1 %v4037_v52 }
 0x11a   :  { %v529_v61 = vpop.f32.mrf.mxu1  ;;  %v749_v41 = vpop.f32.mrf.mxu0  ;;  %3689 = vmatmul.mubr.bf16.gmra.mxu1 %v1599_v1  ;;  %3745 = vmatmul.mubr.bf16.gmra.mxu0 %v1919_v3  ;;  %v1923_v1 = vsel %vm1588_vm3, %v1920_v13, %v1922_v49  ;;  %v4931_v3 = vld [vmem:[%s5378_s0 + $0x6c] sm:$0xff]  }
 0x11b   :  { %v530_v15 = vadd.f32 %v529_v61, %v4725_v7  ;;  %v4892_v19 = vadd.f32 %v749_v41, %v522_v29  ;;  %3692 = vmatprep.mubr.msk.bf16.mxu1 %vm4054_vm0, %v4053_v0  ;;  %3748 = vmatprep.mubr.msk.bf16.mxu0 %vm4054_vm0, %v4053_v0  ;;  %v1604_v41 = vrot.slane %v4658_v27, 2 }
 0x11c   :  { %v3442_v30 = vpop.f32.mrf.mxu1  ;;  %v3498_v28 = vpop.f32.mrf.mxu0  ;;  %3849 = vmatpush3.bf16.msra.mxu0 %v4034_v14 }
 0x11d   :  { %3850 = vmatprep.subr.bf16.mxu0 %v4053_v0 }
 0x11e   :  { %v532_v7 = vpop.f32.mrf.mxu1  ;;  %v752_v21 = vpop.f32.mrf.mxu0 }
 0x11f   :  { %v533_v32 = vadd.f32 %v532_v7, %v4741_v17  ;;  %v4905_v34 = vadd.f32 %v752_v21, %v525_v40 }
 0x120   :  { %v3443_v42 = vpop.f32.mrf.mxu1  ;;  %v3499_v44 = vpop.f32.mrf.mxu0  ;;  %3851 = vmatpush3.bf16.msra.mxu0 %v4038_v58 }
 0x122   :  { %v537_v9 = vpop.f32.mrf.mxu1  ;;  %v757_v29 = vpop.f32.mrf.mxu0  ;;  %3693 = vmatmul.mubr.bf16.gmra.mxu1 %v1601_v37  ;;  %3749 = vmatmul.mubr.bf16.gmra.mxu0 %v1921_v57 }
 0x123   :  { %v538_v17 = vadd.f32 %v537_v9, %v4755_v25  ;;  %v4915_v55 = vadd.f32 %v757_v29, %v530_v15  ;;  %3696 = vmatprep.mubr.msk.bf16.mxu1 %vm4054_vm0, %v4053_v0  ;;  %3752 = vmatprep.mubr.msk.bf16.mxu0 %vm4054_vm0, %v4053_v0  ;;  %v1603_v25 = vsel %vm1588_vm3, %v1600_v22, %v1602_v50  ;;  %v1924_v15 = vrot.slane %v4931_v3, 2 }
 0x124   :  { %v3446_v56 = vpop.f32.mrf.mxu1  ;;  %v3502_v59 = vpop.f32.mrf.mxu0  ;;  %v1606_v9 = vrot.slane %v4674_v23, 2 }
 0x125   :  { %v1925_v21 = vsel %vm1588_vm3, %v1922_v49, %v1924_v15 }
 0x126   :  { %v540_v52 = vpop.f32.mrf.mxu1  ;;  %v760_v60 = vpop.f32.mrf.mxu0 }
 0x127   :  { %v541_v46 = vadd.f32 %v540_v52, %v4769_v39  ;;  %v4924_v40 = vadd.f32 %v760_v60, %v533_v32  ;;  %v4950_v32 = vld [vmem:[%s5378_s0 + $0x74] sm:$0xff]  }
 0x128   :  { %v3447_v2 = vpop.f32.mrf.mxu1  ;;  %v3503_v10 = vpop.f32.mrf.mxu0  ;;  %v1926_v29 = vrot.slane %v4950_v32, 2 }
 0x12a   :  { %v545_v12 = vpop.f32.mrf.mxu1  ;;  %v765_v14 = vpop.f32.mrf.mxu0  ;;  %3697 = vmatmul.mubr.bf16.gmra.mxu1 %v1603_v25  ;;  %3753 = vmatmul.mubr.bf16.gmra.mxu0 %v1923_v1  ;;  %v1927_v60 = vsel %vm1588_vm3, %v1924_v15, %v1926_v29 }
 0x12b   :  { %v546_v61 = vadd.f32 %v545_v12, %v4786_v51  ;;  %v4934_v39 = vadd.f32 %v765_v14, %v538_v17  ;;  %3700 = vmatprep.mubr.msk.bf16.mxu1 %vm4054_vm0, %v4053_v0  ;;  %3756 = vmatprep.mubr.msk.bf16.mxu0 %vm4054_vm0, %v4053_v0  ;;  %v1605_v51 = vsel %vm1588_vm3, %v1602_v50, %v1604_v41  ;;  %v1608_v12 = vrot.slane %v4694_v36, 2 }
 0x12c   :  { %v3450_v22 = vpop.f32.mrf.mxu1  ;;  %v3506_v13 = vpop.f32.mrf.mxu0 }
 0x12d   :  { %v1609_v36 = vsel %vm1588_vm3, %v1606_v9, %v1608_v12 }
 0x12e   :  { %v548_v30 = vpop.f32.mrf.mxu1  ;;  %v768_v28 = vpop.f32.mrf.mxu0 }
 0x12f   :  { %v549_v58 = vadd.f32 %v548_v30, %v4803_v4  ;;  %v4943_v7 = vadd.f32 %v768_v28, %v541_v46  ;;  %v4969_v46 = vld [vmem:[%s5378_s0 + $0x7c] sm:$0xff]   ;;  %v4035_v30 = vld [vmem:[%s5378_s0 + $0x74] ss:$0 sps:$4 sm:$0x33]   ;;  %v4989_v28 = vld [vmem:[%s5378_s0 + $0x84] sm:$0xff]  }
 0x130   :  { %v3451_v27 = vpop.f32.mrf.mxu1  ;;  %v3507_v37 = vpop.f32.mrf.mxu0  ;;  %v1928_v14 = vrot.slane %v4969_v46, 2 }
 0x132   :  { %v553_v57 = vpop.f32.mrf.mxu1  ;;  %v773_v42 = vpop.f32.mrf.mxu0  ;;  %3701 = vmatmul.mubr.bf16.gmra.mxu1 %v1605_v51  ;;  %3757 = vmatmul.mubr.bf16.gmra.mxu0 %v1925_v21  ;;  %v1929_v51 = vsel %vm1588_vm3, %v1926_v29, %v1928_v14  ;;  %v2170_v29 = vshrl.u32 %v4750_v20, 16 }
 0x133   :  { %v554_v44 = vadd.f32 %v553_v57, %v4821_v11  ;;  %v4953_v4 = vadd.f32 %v773_v42, %v546_v61  ;;  %3704 = vmatprep.mubr.msk.bf16.mxu1 %vm4054_vm0, %v4053_v0  ;;  %3760 = vmatprep.mubr.msk.bf16.mxu0 %vm4054_vm0, %v4053_v0  ;;  %v1607_v11 = vsel %vm1588_vm3, %v1604_v41, %v1606_v9  ;;  %v1610_v42 = vrot.slane %v4035_v30, 2 }
 0x134   :  { %v3454_v17 = vpop.f32.mrf.mxu1  ;;  %v3510_v50 = vpop.f32.mrf.mxu0 }
 0x136   :  { %v556_v49 = vpop.f32.mrf.mxu1  ;;  %v776_v56 = vpop.f32.mrf.mxu0 }
 0x137   :  { %v557_v59 = vadd.f32 %v556_v49, %v4839_v24  ;;  %v4962_v52 = vadd.f32 %v776_v56, %v549_v58  ;;  %v2136_v24 = vld [vmem:[%s5378_s0 + $0x34] sm:$0x8] }
 0x138   :  { %v3455_v23 = vpop.f32.mrf.mxu1  ;;  %v3511_v25 = vpop.f32.mrf.mxu0  ;;  %v3045_v15 = vcombine.low %v2136_v24, %v4739_v16  ;;  %v4039_v24 = vld [vmem:[%s5378_s0 + $0x8c] ss:$0 sps:$4 sm:$0x33]  }
 0x139   :  { %v1611_v23 = vsel %vm1588_vm3, %v1608_v12, %v1610_v42  ;;  %v2179_v12 = vshrl.u32 %v4780_v47, 16 }
 0x13a   :  { %v561_v1 = vpop.f32.mrf.mxu1  ;;  %v781_v2 = vpop.f32.mrf.mxu0  ;;  %3705 = vmatmul.mubr.bf16.gmra.mxu1 %v1607_v11  ;;  %3761 = vmatmul.mubr.bf16.gmra.mxu0 %v1927_v60  ;;  %v2162_v17 = vshrl.u32 %v3045_v15, 16  ;;  %v2165_v9 = vshll.u32 %v3045_v15, 16 }
 0x13b   :  { %v4974_v10 = vadd.f32 %v781_v2, %v554_v44  ;;  %3708 = vmatprep.mubr.msk.bf16.mxu1 %vm4054_vm0, %v4053_v0  ;;  %3764 = vmatprep.mubr.msk.bf16.mxu0 %vm4054_vm0, %v4053_v0  ;;  %v562_v16 = vadd.f32 %v561_v1, %v4685_v31  ;;  %v1930_v44 = vrot.slane %v4989_v28, 2  ;;  %v2173_v31 = vshll.u32 %v4750_v20, 16 }
 0x13c   :  { %v3458_v61 = vpop.f32.mrf.mxu1  ;;  %v3514_v41 = vpop.f32.mrf.mxu0  ;;  %v2164_v1 = vrot.slane %v2162_v17, 3  ;;  %v2181_v17 = vrot.slane %v2179_v12, 3 }
 0x13d   :  { %v1931_v25 = vsel %vm1588_vm3, %v1928_v14, %v1930_v44  ;;  %v2167_v61 = vrot.slane %v2165_v9, 4  ;;  %v2172_v41 = vrot.slane %v2170_v29, 3  ;;  %v2175_v20 = vrot.slane %v2173_v31, 4  ;;  %v4040_v9 = vld [vmem:[%s5378_s0 + $0x38] sm:$0xfe]  }
 0x13e   :  { %v564_v22 = vpop.f32.mrf.mxu1  ;;  %v784_v13 = vpop.f32.mrf.mxu0  ;;  %v2182_v14 = vshll.u32 %v4780_v47, 16 }
 0x13f   :  { %v4991_v58 = vadd.f32 %v784_v13, %v557_v59  ;;  %v565_v59 = vadd.f32 %v564_v22, %v4698_v43 }
 0x140   :  { %v3459_v21 = vpop.f32.mrf.mxu1  ;;  %v3515_v27 = vpop.f32.mrf.mxu0  ;;  %v2184_v47 = vrot.slane %v2182_v14, 4 }
 0x141   :  { %v2168_v21 = vor.u32 %v2167_v61, %v2164_v1  ;;  %v2176_v27 = vor.u32 %v2175_v20, %v2172_v41  ;;  %v2568_v1 = vrot.slane %v4040_v9, 1  ;;  %v2188_v61 = vshrl.u32 %v4812_v38, 16 }
 0x142   :  { %v569_v37 = vpop.f32.mrf.mxu1  ;;  %v789_v57 = vpop.f32.mrf.mxu0  ;;  %3709 = vmatmul.mubr.bf16.gmra.mxu1 %v1609_v36  ;;  %3765 = vmatmul.mubr.bf16.gmra.mxu0 %v1929_v51  ;;  %v1932_v51 = vrot.slane %v4039_v24, 2  ;;  %v2191_v41 = vshll.u32 %v4812_v38, 16 }
 0x143   :  { %v4997_v50 = vadd.f32 %v789_v57, %v562_v16  ;;  %3712 = vmatprep.mubr.msk.bf16.mxu1 %vm4054_vm0, %v4053_v0  ;;  %3768 = vmatprep.mubr.msk.bf16.mxu0 %vm4054_vm0, %v4053_v0  ;;  %v570_v43 = vadd.f32 %v569_v37, %v4709_v53  ;;  %v2190_v14 = vrot.slane %v2188_v61, 3 }
 0x144   :  { %v3462_v49 = vpop.f32.mrf.mxu1  ;;  %v3518_v56 = vpop.f32.mrf.mxu0  ;;  %v1933_v31 = vsel %vm1588_vm3, %v1930_v44, %v1932_v51  ;;  %v2193_v51 = vrot.slane %v2191_v41, 4 }
 0x145   :  { %v2177_v49 = vsel %vm2160_vm5, %v2168_v21, %v2176_v27  ;;  %v4041_v56 = vld [vmem:[%s5378_s0 + $0x40] sm:$0xff]   ;;  %v4042_v21 = vld [vmem:[%s5378_s0 + $0x48] sm:$0xff]  }
 0x146   :  { %v572_v11 = vpop.f32.mrf.mxu1  ;;  %v792_v60 = vpop.f32.mrf.mxu0  ;;  %v2569_v44 = vrot.slane %v4041_v56, 1 }
 0x147   :  { %v5008_v2 = vadd.f32 %v792_v60, %v565_v59  ;;  %v573_v37 = vadd.f32 %v572_v11, %v4720_v62 }
 0x148   :  { %v3463_v15 = vpop.f32.mrf.mxu1  ;;  %v3519_v13 = vpop.f32.mrf.mxu0  ;;  %v2570_v12 = vsel %vm2567_vm6, %v2568_v1, %v2569_v44 }
 0x14a   :  { %v577_v22 = vpop.f32.mrf.mxu1  ;;  %v797_v30 = vpop.f32.mrf.mxu0  ;;  %3713 = vmatmul.mubr.bf16.gmra.mxu1 %v1611_v23  ;;  %3769 = vmatmul.mubr.bf16.gmra.mxu0 %v1931_v25  ;;  %v2185_v25 = vor.u32 %v2184_v47, %v2181_v17  ;;  %v2194_v17 = vor.u32 %v2193_v51, %v2190_v14  ;;  %v2571_v47 = vrot.slane %v4042_v21, 1 }
 0x14b   :  { %v5016_v36 = vadd.f32 %v797_v30, %v570_v43  ;;  %3772 = vmatprep.mubr.msk.bf16.mxu0 %vm4054_vm0, %v4053_v0  ;;  %3792 = vmatprep.mubr.msk.bf16.mxu1 %vm4054_vm0, %v4053_v0  ;;  %v578_v11 = vadd.f32 %v577_v22, %v4727_v8 }
 0x14c   :  { %v3466_v53 = vpop.f32.mrf.mxu1  ;;  %v3522_v16 = vpop.f32.mrf.mxu0  ;;  %v2186_v22 = vsel %vm2160_vm5, %v2176_v27, %v2185_v25  ;;  %v2197_v27 = vshrl.u32 %v4850_v33, 16 }
 0x14e   :  { %v580_v57 = vpop.f32.mrf.mxu1  ;;  %v800_v42 = vpop.f32.mrf.mxu0 }
 0x14f   :  { %v5026_v29 = vadd.f32 %v800_v42, %v573_v37  ;;  %v581_v15 = vadd.f32 %v580_v57, %v4743_v18  ;;  %v2200_v57 = vshll.u32 %v4850_v33, 16  ;;  %v4043_v33 = vld [vmem:[%s5378_s0 + $0x50] sm:$0xff]  }
 0x150   :  { %v3467_v59 = vpop.f32.mrf.mxu1  ;;  %v3523_v62 = vpop.f32.mrf.mxu0 }
 0x151   :  { %v2199_v59 = vrot.slane %v2197_v27, 3  ;;  %v2202_v62 = vrot.slane %v2200_v57, 4 }
 0x152   :  { %v585_v60 = vpop.f32.mrf.mxu1  ;;  %v805_v23 = vpop.f32.mrf.mxu0  ;;  %3773 = vmatmul.mubr.bf16.gmra.mxu0 %v1933_v31  ;;  %3793 = vmatmul.mubr.bf16.vlgmr.msra.gmra.mxu1 %v2177_v49 }
 0x153   :  { %v5034_v24 = vadd.f32 %v805_v23, %v578_v11  ;;  %3796 = vmatprep.mubr.msk.bf16.mxu1 %vm4054_vm0, %v4053_v0  ;;  %3852 = vmatprep.mubr.msk.bf16.mxu0 %vm4054_vm0, %v4053_v0  ;;  %v586_v16 = vadd.f32 %v585_v60, %v4757_v26  ;;  %v2195_v60 = vsel %vm2160_vm5, %v2185_v25, %v2194_v17  ;;  %v2206_v25 = vshrl.u32 %v4885_v6, 16 }
 0x154   :  { %v3470_v8 = vpop.f32.mrf.mxu1  ;;  %v3526_v20 = vpop.f32.mrf.mxu0  ;;  %v2572_v23 = vsel %vm2567_vm6, %v2569_v44, %v2571_v47 }
 0x155   :  { %v2203_v20 = vor.u32 %v2202_v62, %v2199_v59 }
 0x156   :  { %v588_v13 = vpop.f32.mrf.mxu1  ;;  %v808_v43 = vpop.f32.mrf.mxu0 }
 0x157   :  { %v5044_v30 = vadd.f32 %v808_v43, %v581_v15  ;;  %v589_v31 = vadd.f32 %v588_v13, %v4771_v35  ;;  %v2573_v15 = vrot.slane %v4043_v33, 1  ;;  %v2204_v21 = vsel %vm2160_vm5, %v2194_v17, %v2203_v20 }
 0x158   :  { %v3471_v38 = vpop.f32.mrf.mxu1  ;;  %v3527_v53 = vpop.f32.mrf.mxu0  ;;  %v2215_v17 = vshrl.u32 %v4912_v45, 16 }
 0x15a   :  { %v593_v37 = vpop.f32.mrf.mxu1  ;;  %v813_v18 = vpop.f32.mrf.mxu0  ;;  %3797 = vmatmul.mubr.bf16.gmra.mxu1 %v2186_v22  ;;  %3853 = vmatmul.mubr.bf16.vlgmr.msra.gmra.mxu0 %v2570_v12  ;;  %v2217_v33 = vrot.slane %v2215_v17, 3  ;;  %v2236_v17 = vshll.u32 %v4950_v32, 16 }
 0x15b   :  { %v5053_v42 = vadd.f32 %v813_v18, %v586_v16  ;;  %3800 = vmatprep.mubr.msk.bf16.mxu1 %vm4054_vm0, %v4053_v0  ;;  %3856 = vmatprep.mubr.msk.bf16.mxu0 %vm4054_vm0, %v4053_v0  ;;  %v594_v41 = vadd.f32 %v593_v37, %v4788_v54  ;;  %v2209_v54 = vshll.u32 %v4885_v6, 16  ;;  %v2208_v16 = vrot.slane %v2206_v25, 3  ;;  %v4044_v6 = vld [vmem:[%s5378_s0 + $0x58] sm:$0xff]  }
 0x15c   :  { %v3474_v9 = vpop.f32.mrf.mxu1  ;;  %v3530_v26 = vpop.f32.mrf.mxu0 }
 0x15d   :  { %v2211_v37 = vrot.slane %v2209_v54, 4 }
 0x15e   :  { %v596_v49 = vpop.f32.mrf.mxu1  ;;  %v816_v56 = vpop.f32.mrf.mxu0 }
 0x15f   :  { %v5063_v11 = vadd.f32 %v816_v56, %v589_v31  ;;  %v597_v12 = vadd.f32 %v596_v49, %v4805_v63  ;;  %v2575_v31 = vrot.slane %v4044_v6, 1  ;;  %v4046_v6 = vld [vmem:[%s5378_s0 + $0x68] sm:$0xff]  }
 0x160   :  { %v3475_v1 = vpop.f32.mrf.mxu1  ;;  %v3531_v61 = vpop.f32.mrf.mxu0 }
 0x161   :  { %v2576_v61 = vsel %vm2567_vm6, %v2573_v15, %v2575_v31 }
 0x162   :  { %v821_v8 = vpop.f32.mrf.mxu0  ;;  %v1063_v35 = vpop.f32.mrf.mxu1  ;;  %3801 = vmatmul.mubr.bf16.gmra.mxu1 %v2195_v60  ;;  %3857 = vmatmul.mubr.bf16.gmra.mxu0 %v2572_v23 }
 0x163   :  { %v5068_v13 = vadd.f32 %v821_v8, %v594_v41  ;;  %v1150_v43 = vadd.f32 %v1063_v35, %v4860_v48  ;;  %3804 = vmatprep.mubr.msk.bf16.mxu1 %vm4054_vm0, %v4053_v0  ;;  %3860 = vmatprep.mubr.msk.bf16.mxu0 %vm4054_vm0, %v4053_v0  ;;  %v2574_v48 = vsel %vm2567_vm6, %v2571_v47, %v2573_v15  ;;  %v2218_v47 = vshll.u32 %v4912_v45, 16 }
 0x164   :  { %v3534_v44 = vpop.f32.mrf.mxu0  ;;  %v3554_v22 = vpop.f32.mrf.mxu1 }
 0x165   :  { %v2220_v60 = vrot.slane %v2218_v47, 4 }
 0x166   :  { %v824_v14 = vpop.f32.mrf.mxu0  ;;  %v1066_v51 = vpop.f32.mrf.mxu1 }
 0x167   :  { %v5080_v38 = vadd.f32 %v824_v14, %v597_v12  ;;  %v1151_v53 = vadd.f32 %v1066_v51, %v4878_v5  ;;  %v2212_v5 = vor.u32 %v2211_v37, %v2208_v16  ;;  %v2221_v25 = vor.u32 %v2220_v60, %v2217_v33 }
 0x168   :  { %v3535_v18 = vpop.f32.mrf.mxu0  ;;  %v3555_v27 = vpop.f32.mrf.mxu1  ;;  %v2238_v33 = vrot.slane %v2236_v17, 4 }
 0x169   :  { %v2213_v1 = vsel %vm2160_vm5, %v2203_v20, %v2212_v5  ;;  %v2227_v20 = vshll.u32 %v4931_v3, 16 }
 0x16a   :  { %v1071_v57 = vpop.f32.mrf.mxu1  ;;  %v1455_v63 = vpop.f32.mrf.mxu0  ;;  %3805 = vmatmul.mubr.bf16.gmra.mxu1 %v2204_v21  ;;  %3861 = vmatmul.mubr.bf16.gmra.mxu0 %v2574_v48  ;;  %v2222_v21 = vsel %vm2160_vm5, %v2212_v5, %v2221_v25  ;;  %v2579_v5 = vrot.slane %v4046_v6, 1 }
 0x16b   :  { %v1152_v9 = vadd.f32 %v1071_v57, %v4892_v19  ;;  %v5089_v26 = vadd.f32 %v1455_v63, %v1150_v43  ;;  %3808 = vmatprep.mubr.msk.bf16.mxu1 %vm4054_vm0, %v4053_v0  ;;  %3864 = vmatprep.mubr.msk.bf16.mxu0 %vm4054_vm0, %v4053_v0  ;;  %v4045_v19 = vld [vmem:[%s5378_s0 + $0x60] sm:$0xff]   ;;  %v2229_v37 = vrot.slane %v2227_v20, 4  ;;  %v2233_v63 = vshrl.u32 %v4950_v32, 16 }
 0x16c   :  { %v3558_v49 = vpop.f32.mrf.mxu1  ;;  %v3614_v56 = vpop.f32.mrf.mxu0  ;;  %v2577_v54 = vrot.slane %v4045_v19, 1 }
 0x16e   :  { %v1074_v59 = vpop.f32.mrf.mxu1  ;;  %v1458_v62 = vpop.f32.mrf.mxu0 }
 0x16f   :  { %v1153_v45 = vadd.f32 %v1074_v59, %v4905_v34  ;;  %v5099_v23 = vadd.f32 %v1458_v62, %v1151_v53  ;;  %v2224_v34 = vshrl.u32 %v4931_v3, 16  ;;  %v2235_v62 = vrot.slane %v2233_v63, 3 }
 0x170   :  { %v3559_v41 = vpop.f32.mrf.mxu1  ;;  %v3615_v8 = vpop.f32.mrf.mxu0 }
 0x171   :  { %v2226_v16 = vrot.slane %v2224_v34, 3 }
 0x172   :  { %v1079_v35 = vpop.f32.mrf.mxu1  ;;  %v1463_v43 = vpop.f32.mrf.mxu0  ;;  %3809 = vmatmul.mubr.bf16.gmra.mxu1 %v2213_v1  ;;  %3865 = vmatmul.mubr.bf16.gmra.mxu0 %v2576_v61 }
 0x173   :  { %v1154_v44 = vadd.f32 %v1079_v35, %v4915_v55  ;;  %v5104_v22 = vadd.f32 %v1463_v43, %v1152_v9  ;;  %3812 = vmatprep.mubr.msk.bf16.mxu1 %vm4054_vm0, %v4053_v0  ;;  %3868 = vmatprep.mubr.msk.bf16.mxu0 %vm4054_vm0, %v4053_v0  ;;  %v2578_v55 = vsel %vm2567_vm6, %v2575_v31, %v2577_v54 }
 0x174   :  { %v3562_v15 = vpop.f32.mrf.mxu1  ;;  %v3618_v12 = vpop.f32.mrf.mxu0  ;;  %v2230_v9 = vor.u32 %v2229_v37, %v2226_v16  ;;  %v2239_v35 = vor.u32 %v2238_v33, %v2235_v62  ;;  %v4048_v16 = vld [vmem:[%s5378_s0 + $0x78] sm:$0xff]  }
 0x175   :  { %v2583_v17 = vrot.slane %v4048_v16, 1 }
 0x176   :  { %v1082_v14 = vpop.f32.mrf.mxu1  ;;  %v1466_v51 = vpop.f32.mrf.mxu0  ;;  %v2231_v19 = vsel %vm2160_vm5, %v2221_v25, %v2230_v9  ;;  %v2245_v25 = vshll.u32 %v4969_v46, 16 }
 0x177   :  { %v1155_v48 = vadd.f32 %v1082_v14, %v4924_v40  ;;  %v5115_v53 = vadd.f32 %v1466_v51, %v1153_v45  ;;  %v2580_v45 = vsel %vm2567_vm6, %v2577_v54, %v2579_v5  ;;  %v2240_v14 = vsel %vm2160_vm5, %v2230_v9, %v2239_v35 }
 0x178   :  { %v3563_v18 = vpop.f32.mrf.mxu1  ;;  %v3619_v3 = vpop.f32.mrf.mxu0 }
 0x179   :  { %v2251_v3 = vshrl.u32 %v4989_v28, 16 }
 0x17a   :  { %v1087_v27 = vpop.f32.mrf.mxu1  ;;  %v1471_v57 = vpop.f32.mrf.mxu0  ;;  %3813 = vmatmul.mubr.bf16.gmra.mxu1 %v2222_v21  ;;  %3869 = vmatmul.mubr.bf16.gmra.mxu0 %v2578_v55 }
 0x17b   :  { %v1156_v40 = vadd.f32 %v1087_v27, %v4934_v39  ;;  %v5123_v47 = vadd.f32 %v1471_v57, %v1154_v44  ;;  %3816 = vmatprep.mubr.msk.bf16.mxu1 %vm4054_vm0, %v4053_v0  ;;  %3872 = vmatprep.mubr.msk.bf16.mxu0 %vm4054_vm0, %v4053_v0  ;;  %v4047_v39 = vld [vmem:[%s5378_s0 + $0x70] sm:$0xff]   ;;  %v2254_v27 = vshll.u32 %v4989_v28, 16 }
 0x17c   :  { %v3566_v31 = vpop.f32.mrf.mxu1  ;;  %v3622_v49 = vpop.f32.mrf.mxu0  ;;  %v2581_v43 = vrot.slane %v4047_v39, 1  ;;  %v4050_v39 = vld [vmem:[%s5378_s0 + $0x8c] ss:$0 sps:$4 sm:$0xff]  }
 0x17d   :  { %v2253_v49 = vrot.slane %v2251_v3, 3 }
 0x17e   :  { %v1090_v56 = vpop.f32.mrf.mxu1  ;;  %v1474_v59 = vpop.f32.mrf.mxu0  ;;  %v2584_v33 = vsel %vm2567_vm6, %v2581_v43, %v2583_v17 }
 0x17f   :  { %v1157_v32 = vadd.f32 %v1090_v56, %v4943_v7  ;;  %v5133_v60 = vadd.f32 %v1474_v59, %v1155_v48  ;;  %v2242_v7 = vshrl.u32 %v4969_v46, 16  ;;  %v2247_v48 = vrot.slane %v2245_v25, 4 }
 0x180   :  { %v3567_v1 = vpop.f32.mrf.mxu1  ;;  %v3623_v61 = vpop.f32.mrf.mxu0  ;;  %v2256_v56 = vrot.slane %v2254_v27, 4 }
 0x181   :  { %v2244_v55 = vrot.slane %v2242_v7, 3 }
 0x182   :  { %v1095_v41 = vpop.f32.mrf.mxu1  ;;  %v1479_v8 = vpop.f32.mrf.mxu0  ;;  %3817 = vmatmul.mubr.bf16.gmra.mxu1 %v2231_v19  ;;  %3873 = vmatmul.mubr.bf16.gmra.mxu0 %v2580_v45  ;;  %v2257_v61 = vor.u32 %v2256_v56, %v2253_v49 }
 0x183   :  { %v1158_v44 = vadd.f32 %v1095_v41, %v4953_v4  ;;  %v5138_v34 = vadd.f32 %v1479_v8, %v1156_v40  ;;  %3820 = vmatprep.mubr.msk.bf16.mxu1 %vm4054_vm0, %v4053_v0  ;;  %3876 = vmatprep.mubr.msk.bf16.mxu0 %vm4054_vm0, %v4053_v0  ;;  %v2582_v4 = vsel %vm2567_vm6, %v2579_v5, %v2581_v43  ;;  %v2263_v43 = vshll.u32 %v4050_v39, 16 }
 0x184   :  { %v3570_v54 = vpop.f32.mrf.mxu1  ;;  %v3626_v20 = vpop.f32.mrf.mxu0  ;;  %v2248_v63 = vor.u32 %v2247_v48, %v2244_v55 }
 0x186   :  { %v1098_v15 = vpop.f32.mrf.mxu1  ;;  %v1482_v12 = vpop.f32.mrf.mxu0  ;;  %v2249_v62 = vsel %vm2160_vm5, %v2239_v35, %v2248_v63  ;;  %v2260_v35 = vshrl.u32 %v4050_v39, 16  ;;  %v2258_v20 = vsel %vm2160_vm5, %v2248_v63, %v2257_v61 }
 0x187   :  { %v1159_v51 = vadd.f32 %v1098_v15, %v4962_v52  ;;  %v5149_v21 = vadd.f32 %v1482_v12, %v1157_v32 }
 0x188   :  { %v3571_v37 = vpop.f32.mrf.mxu1  ;;  %v3627_v46 = vpop.f32.mrf.mxu0 }
 0x18a   :  { %v1103_v6 = vpop.f32.mrf.mxu1  ;;  %v1487_v18 = vpop.f32.mrf.mxu0  ;;  %3821 = vmatmul.mubr.bf16.gmra.mxu1 %v2240_v14  ;;  %3877 = vmatmul.mubr.bf16.gmra.mxu0 %v2582_v4  ;;  %v2262_v14 = vrot.slane %v2260_v35, 3  ;;  %v2265_v4 = vrot.slane %v2263_v43, 4 }
 0x18b   :  { %v1160_v52 = vadd.f32 %v1103_v6, %v4974_v10  ;;  %v5157_v57 = vadd.f32 %v1487_v18, %v1158_v44  ;;  %3824 = vmatprep.mubr.msk.bf16.mxu1 %vm4054_vm0, %v4053_v0  ;;  %3880 = vmatprep.mubr.msk.bf16.mxu0 %vm4054_vm0, %v4053_v0  ;;  %v4049_v10 = vld [vmem:[%s5378_s0 + $0x80] sm:$0xff]  }
 0x18c   :  { %v3574_v40 = vpop.f32.mrf.mxu1  ;;  %v3630_v9 = vpop.f32.mrf.mxu0  ;;  %v2585_v41 = vrot.slane %v4049_v10, 1 }
 0x18e   :  { %v1106_v5 = vpop.f32.mrf.mxu1  ;;  %v1490_v31 = vpop.f32.mrf.mxu0  ;;  %v2586_v15 = vsel %vm2567_vm6, %v2583_v17, %v2585_v41 }
 0x18f   :  { %v1161_v28 = vadd.f32 %v1106_v5, %v4991_v58  ;;  %v5167_v59 = vadd.f32 %v1490_v31, %v1159_v51  ;;  %v4051_v51 = vld [vmem:[%s5378_s0 + $0x88] sm:$0xff]   ;;  %v4052_v5 = vld [vmem:[%s5378_s0 + $0x90] ss:$0 sps:$4 sm:$0x11]  }
 0x190   :  { %v3575_v32 = vpop.f32.mrf.mxu1  ;;  %v3631_v19 = vpop.f32.mrf.mxu0  ;;  %v2587_v18 = vrot.slane %v4051_v51, 1 }
 0x192   :  { %v1111_v45 = vpop.f32.mrf.mxu1  ;;  %v1495_v1 = vpop.f32.mrf.mxu0  ;;  %3825 = vmatmul.mubr.bf16.gmra.mxu1 %v2249_v62  ;;  %3881 = vmatmul.mubr.bf16.gmra.mxu0 %v2584_v33  ;;  %v2588_v9 = vsel %vm2567_vm6, %v2585_v41, %v2587_v18 }
 0x193   :  { %v1162_v58 = vadd.f32 %v1111_v45, %v4997_v50  ;;  %v5175_v8 = vadd.f32 %v1495_v1, %v1160_v52  ;;  %3828 = vmatprep.mubr.msk.bf16.mxu1 %vm4054_vm0, %v4053_v0  ;;  %3884 = vmatprep.mubr.msk.bf16.mxu0 %vm4054_vm0, %v4053_v0 }
 0x194   :  { %v3578_v44 = vpop.f32.mrf.mxu1  ;;  %v3634_v7 = vpop.f32.mrf.mxu0 }
 0x196   :  { %v1114_v25 = vpop.f32.mrf.mxu1  ;;  %v1498_v54 = vpop.f32.mrf.mxu0 }
 0x197   :  { %v1163_v50 = vadd.f32 %v1114_v25, %v5008_v2  ;;  %v5184_v12 = vadd.f32 %v1498_v54, %v1161_v28  ;;  %v2266_v2 = vor.u32 %v2265_v4, %v2262_v14 }
 0x198   :  { %v3579_v55 = vpop.f32.mrf.mxu1  ;;  %v3635_v48 = vpop.f32.mrf.mxu0 }
 0x19a   :  { %v1119_v16 = vpop.f32.mrf.mxu1  ;;  %v1503_v37 = vpop.f32.mrf.mxu0  ;;  %3829 = vmatmul.mubr.bf16.gmra.mxu1 %v2258_v20  ;;  %3885 = vmatmul.mubr.bf16.gmra.mxu0 %v2586_v15 }
 0x19b   :  { %v1164_v46 = vadd.f32 %v1119_v16, %v5016_v36  ;;  %v5190_v6 = vadd.f32 %v1503_v37, %v1162_v58  ;;  %3832 = vmatprep.mubr.msk.bf16.mxu1 %vm4054_vm0, %v4053_v0  ;;  %3888 = vmatprep.mubr.msk.bf16.mxu0 %vm4054_vm0, %v4053_v0  ;;  %v2267_v36 = vsel %vm2160_vm5, %v2257_v61, %v2266_v2 }
 0x19c   :  { %v3582_v3 = vpop.f32.mrf.mxu1  ;;  %v3638_v27 = vpop.f32.mrf.mxu0 }
 0x19e   :  { %v1122_v52 = vpop.f32.mrf.mxu1  ;;  %v1506_v63 = vpop.f32.mrf.mxu0 }
 0x19f   :  { %v1165_v17 = vadd.f32 %v1122_v52, %v5026_v29  ;;  %v5197_v40 = vadd.f32 %v1506_v63, %v1163_v50  ;;  %v2589_v29 = vrot.slane %v4052_v5, 1 }
 0x1a0   :  { %v3583_v31 = vpop.f32.mrf.mxu1  ;;  %v3639_v49 = vpop.f32.mrf.mxu0 }
 0x1a1   :  { %v2590_v61 = vsel %vm2567_vm6, %v2587_v18, %v2589_v29 }
 0x1a2   :  { %v1127_v56 = vpop.f32.mrf.mxu1  ;;  %v1511_v10 = vpop.f32.mrf.mxu0  ;;  %3833 = vmatmul.mubr.bf16.gmra.mxu1 %v2267_v36  ;;  %3889 = vmatmul.mubr.bf16.gmra.mxu0 %v2588_v9 }
 0x1a3   :  { %v1166_v28 = vadd.f32 %v1127_v56, %v5034_v24  ;;  %v5205_v62 = vadd.f32 %v1511_v10, %v1164_v46  ;;  %3892 = vmatprep.mubr.msk.bf16.mxu0 %vm4054_vm0, %v4053_v0 }
 0x1a4   :  { %v3586_v33 = vpop.f32.mrf.mxu1  ;;  %v3642_v39 = vpop.f32.mrf.mxu0 }
 0x1a6   :  { %v1130_v32 = vpop.f32.mrf.mxu1  ;;  %v1514_v19 = vpop.f32.mrf.mxu0 }
 0x1a7   :  { %v1167_v45 = vadd.f32 %v1130_v32, %v5044_v30  ;;  %v5210_v1 = vadd.f32 %v1514_v19, %v1165_v17 }
 0x1a8   :  { %v3587_v41 = vpop.f32.mrf.mxu1  ;;  %v3643_v58 = vpop.f32.mrf.mxu0 }
 0x1aa   :  { %v1135_v35 = vpop.f32.mrf.mxu1  ;;  %v1519_v24 = vpop.f32.mrf.mxu0  ;;  %3893 = vmatmul.mubr.bf16.gmra.mxu0 %v2590_v61 }
 0x1ab   :  { %v1168_v43 = vadd.f32 %v1135_v35, %v5053_v42  ;;  %v5214_v44 = vadd.f32 %v1519_v24, %v1166_v28 }
 0x1ac   :  { %v3590_v0 = vpop.f32.mrf.mxu1  ;;  %v3646_v7 = vpop.f32.mrf.mxu0 }
 0x1ae   :  { %v1138_v25 = vpop.f32.mrf.mxu1  ;;  %v1522_v54 = vpop.f32.mrf.mxu0 }
 0x1af   :  { %v1169_v20 = vadd.f32 %v1138_v25, %v5063_v11  ;;  %v5217_v30 = vadd.f32 %v1522_v54, %v1167_v45 }
 0x1b0   :  { %v3591_v15 = vpop.f32.mrf.mxu1  ;;  %v3647_v50 = vpop.f32.mrf.mxu0 }
 0x1b2   :  { %v1143_v14 = vpop.f32.mrf.mxu1  ;;  %v1527_v4 = vpop.f32.mrf.mxu0 }
 0x1b3   :  { %v1170_v51 = vadd.f32 %v1143_v14, %v5068_v13  ;;  %v5220_v55 = vadd.f32 %v1527_v4, %v1168_v43 }
 0x1b4   :  { %v3594_v48 = vpop.f32.mrf.mxu1  ;;  %v3650_v42 = vpop.f32.mrf.mxu0 }
 0x1b6   :  { %v1146_v16 = vpop.f32.mrf.mxu1  ;;  %v1530_v37 = vpop.f32.mrf.mxu0 }
 0x1b7   :  { %v1171_v46 = vadd.f32 %v1146_v16, %v5080_v38  ;;  %v5223_v2 = vadd.f32 %v1530_v37, %v1169_v20 }
 0x1b8   :  { %v3595_v18 = vpop.f32.mrf.mxu1  ;;  %v3651_v11 = vpop.f32.mrf.mxu0 }
 0x1ba   :  { %v1535_v3 = vpop.f32.mrf.mxu0  ;;  %v1705_v27 = vpop.f32.mrf.mxu1 }
 0x1bb   :  { %v5225_v52 = vadd.f32 %v1535_v3, %v1170_v51  ;;  %v1792_v63 = vadd.f32 %v1705_v27, %v5089_v26 }
 0x1bc   :  { %v3654_v17 = vpop.f32.mrf.mxu0  ;;  %v3674_v13 = vpop.f32.mrf.mxu1 }
 0x1be   :  { %v1538_v36 = vpop.f32.mrf.mxu0  ;;  %v1708_v9 = vpop.f32.mrf.mxu1 }
 0x1bf   :  { %v5228_v5 = vadd.f32 %v1538_v36, %v1171_v46  ;;  %v1793_v31 = vadd.f32 %v1708_v9, %v5099_v23 }
 0x1c0   :  { %v3655_v49 = vpop.f32.mrf.mxu0  ;;  %v3675_v38 = vpop.f32.mrf.mxu1 }
 0x1c2   :  { %v1713_v56 = vpop.f32.mrf.mxu1  ;;  %v2027_v10 = vpop.f32.mrf.mxu0 }
 0x1c3   :  { %v1794_v28 = vadd.f32 %v1713_v56, %v5104_v22  ;;  %v5232_v29 = vadd.f32 %v2027_v10, %v1792_v63 }
 0x1c4   :  { %v3678_v33 = vpop.f32.mrf.mxu1  ;;  %v3734_v39 = vpop.f32.mrf.mxu0 }
 0x1c6   :  { %v1716_v32 = vpop.f32.mrf.mxu1  ;;  %v2030_v26 = vpop.f32.mrf.mxu0 }
 0x1c7   :  { %v1795_v19 = vadd.f32 %v1716_v32, %v5115_v53  ;;  %v5235_v45 = vadd.f32 %v2030_v26, %v1793_v31 }
 0x1c8   :  { %v3679_v61 = vpop.f32.mrf.mxu1  ;;  %v3735_v41 = vpop.f32.mrf.mxu0 }
 0x1ca   :  { %v1721_v58 = vpop.f32.mrf.mxu1  ;;  %v2035_v23 = vpop.f32.mrf.mxu0 }
 0x1cb   :  { %v1796_v35 = vadd.f32 %v1721_v58, %v5123_v47  ;;  %v5238_v24 = vadd.f32 %v2035_v23, %v1794_v28 }
 0x1cc   :  { %v3682_v43 = vpop.f32.mrf.mxu1  ;;  %v3738_v22 = vpop.f32.mrf.mxu0 }
 0x1ce   :  { %v1724_v0 = vpop.f32.mrf.mxu1  ;;  %v2038_v7 = vpop.f32.mrf.mxu0 }
 0x1cf   :  { %v1797_v25 = vadd.f32 %v1724_v0, %v5133_v60  ;;  %v5241_v54 = vadd.f32 %v2038_v7, %v1795_v19 }
 0x1d0   :  { %v3683_v20 = vpop.f32.mrf.mxu1  ;;  %v3739_v53 = vpop.f32.mrf.mxu0 }
 0x1d2   :  { %v1729_v15 = vpop.f32.mrf.mxu1  ;;  %v2043_v50 = vpop.f32.mrf.mxu0 }
 0x1d3   :  { %v1798_v14 = vadd.f32 %v1729_v15, %v5138_v34  ;;  %v5244_v4 = vadd.f32 %v2043_v50, %v1796_v35 }
 0x1d4   :  { %v3686_v51 = vpop.f32.mrf.mxu1  ;;  %v3742_v47 = vpop.f32.mrf.mxu0 }
 0x1d6   :  { %v1732_v48 = vpop.f32.mrf.mxu1  ;;  %v2046_v42 = vpop.f32.mrf.mxu0 }
 0x1d7   :  { %v1799_v16 = vadd.f32 %v1732_v48, %v5149_v21  ;;  %v5247_v37 = vadd.f32 %v2046_v42, %v1797_v25 }
 0x1d8   :  { %v3687_v46 = vpop.f32.mrf.mxu1  ;;  %v3743_v60 = vpop.f32.mrf.mxu0 }
 0x1da   :  { %v1737_v18 = vpop.f32.mrf.mxu1  ;;  %v2051_v11 = vpop.f32.mrf.mxu0 }
 0x1db   :  { %v1800_v3 = vadd.f32 %v1737_v18, %v5157_v57  ;;  %v5250_v27 = vadd.f32 %v2051_v11, %v1798_v14 }
 0x1dc   :  { %v3690_v63 = vpop.f32.mrf.mxu1  ;;  %v3746_v34 = vpop.f32.mrf.mxu0 }
 0x1de   :  { %v1740_v17 = vpop.f32.mrf.mxu1  ;;  %v2054_v13 = vpop.f32.mrf.mxu0 }
 0x1df   :  { %v1801_v36 = vadd.f32 %v1740_v17, %v5167_v59  ;;  %v5253_v9 = vadd.f32 %v2054_v13, %v1799_v16 }
 0x1e0   :  { %v3691_v31 = vpop.f32.mrf.mxu1  ;;  %v3747_v21 = vpop.f32.mrf.mxu0 }
 0x1e2   :  { %v1745_v49 = vpop.f32.mrf.mxu1  ;;  %v2059_v38 = vpop.f32.mrf.mxu0 }
 0x1e3   :  { %v1802_v56 = vadd.f32 %v1745_v49, %v5175_v8  ;;  %v5256_v10 = vadd.f32 %v2059_v38, %v1800_v3 }
 0x1e4   :  { %v3694_v28 = vpop.f32.mrf.mxu1  ;;  %v3750_v57 = vpop.f32.mrf.mxu0 }
 0x1e6   :  { %v1748_v33 = vpop.f32.mrf.mxu1  ;;  %v2062_v39 = vpop.f32.mrf.mxu0 }
 0x1e7   :  { %v1803_v32 = vadd.f32 %v1748_v33, %v5184_v12  ;;  %v5259_v26 = vadd.f32 %v2062_v39, %v1801_v36 }
 0x1e8   :  { %v3695_v19 = vpop.f32.mrf.mxu1  ;;  %v3751_v59 = vpop.f32.mrf.mxu0 }
 0x1ea   :  { %v1753_v61 = vpop.f32.mrf.mxu1  ;;  %v2067_v41 = vpop.f32.mrf.mxu0 }
 0x1eb   :  { %v1804_v58 = vadd.f32 %v1753_v61, %v5190_v6  ;;  %v5262_v23 = vadd.f32 %v2067_v41, %v1802_v56 }
 0x1ec   :  { %v3698_v35 = vpop.f32.mrf.mxu1  ;;  %v3754_v8 = vpop.f32.mrf.mxu0 }
 0x1ee   :  { %v1756_v43 = vpop.f32.mrf.mxu1  ;;  %v2070_v22 = vpop.f32.mrf.mxu0 }
 0x1ef   :  { %v1805_v0 = vadd.f32 %v1756_v43, %v5197_v40  ;;  %v5265_v7 = vadd.f32 %v2070_v22, %v1803_v32 }
 0x1f0   :  { %v3699_v25 = vpop.f32.mrf.mxu1  ;;  %v3755_v12 = vpop.f32.mrf.mxu0 }
 0x1f2   :  { %v1761_v20 = vpop.f32.mrf.mxu1  ;;  %v2075_v53 = vpop.f32.mrf.mxu0 }
 0x1f3   :  { %v1806_v15 = vadd.f32 %v1761_v20, %v5205_v62  ;;  %v5268_v50 = vadd.f32 %v2075_v53, %v1804_v58 }
 0x1f4   :  { %v3702_v14 = vpop.f32.mrf.mxu1  ;;  %v3758_v6 = vpop.f32.mrf.mxu0 }
 0x1f6   :  { %v1764_v51 = vpop.f32.mrf.mxu1  ;;  %v2078_v47 = vpop.f32.mrf.mxu0 }
 0x1f7   :  { %v1807_v48 = vadd.f32 %v1764_v51, %v5210_v1  ;;  %v5271_v42 = vadd.f32 %v2078_v47, %v1805_v0 }
 0x1f8   :  { %v3703_v16 = vpop.f32.mrf.mxu1  ;;  %v3759_v40 = vpop.f32.mrf.mxu0 }
 0x1fa   :  { %v1769_v46 = vpop.f32.mrf.mxu1  ;;  %v2083_v60 = vpop.f32.mrf.mxu0 }
 0x1fb   :  { %v1808_v18 = vadd.f32 %v1769_v46, %v5214_v44  ;;  %v5274_v11 = vadd.f32 %v2083_v60, %v1806_v15 }
 0x1fc   :  { %v3706_v3 = vpop.f32.mrf.mxu1  ;;  %v3762_v62 = vpop.f32.mrf.mxu0 }
 0x1fd   :  { %v5300_v3 = vld [vmem:[%s5379_s2] ss:$0 sm:$0xff] }
 0x1fe   :  { %v1772_v63 = vpop.f32.mrf.mxu1  ;;  %v2086_v34 = vpop.f32.mrf.mxu0 }
 0x1ff   :  { %v1809_v17 = vadd.f32 %v1772_v63, %v5217_v30  ;;  %v5277_v13 = vadd.f32 %v2086_v34, %v1807_v48 }
 0x200   :  { %v3707_v36 = vpop.f32.mrf.mxu1  ;;  %v3763_v1 = vpop.f32.mrf.mxu0 }
 0x202   :  { %v1777_v31 = vpop.f32.mrf.mxu1  ;;  %v2091_v21 = vpop.f32.mrf.mxu0 }
 0x203   :  { %v1810_v49 = vadd.f32 %v1777_v31, %v5220_v55  ;;  %v5280_v38 = vadd.f32 %v2091_v21, %v1808_v18 }
 0x204   :  { %v3710_v56 = vpop.f32.mrf.mxu1  ;;  %v3766_v44 = vpop.f32.mrf.mxu0 }
 0x206   :  { %v1780_v28 = vpop.f32.mrf.mxu1  ;;  %v2094_v57 = vpop.f32.mrf.mxu0 }
 0x207   :  { %v1811_v33 = vadd.f32 %v1780_v28, %v5223_v2  ;;  %v5283_v39 = vadd.f32 %v2094_v57, %v1809_v17 }
 0x208   :  { %v3711_v32 = vpop.f32.mrf.mxu1  ;;  %v3767_v30 = vpop.f32.mrf.mxu0 }
 0x20a   :  { %v1785_v19 = vpop.f32.mrf.mxu1  ;;  %v2099_v59 = vpop.f32.mrf.mxu0 }
 0x20b   :  { %v1812_v61 = vadd.f32 %v1785_v19, %v5225_v52  ;;  %v5286_v41 = vadd.f32 %v2099_v59, %v1810_v49 }
 0x20c   :  { %v3714_v58 = vpop.f32.mrf.mxu1  ;;  %v3770_v55 = vpop.f32.mrf.mxu0 }
 0x20e   :  { %v1788_v35 = vpop.f32.mrf.mxu1  ;;  %v2102_v8 = vpop.f32.mrf.mxu0 }
 0x20f   :  { %v1813_v43 = vadd.f32 %v1788_v35, %v5228_v5  ;;  %v5289_v22 = vadd.f32 %v2102_v8, %v1811_v33 }
 0x210   :  { %v3715_v0 = vpop.f32.mrf.mxu1  ;;  %v3771_v2 = vpop.f32.mrf.mxu0 }
 0x212   :  { %v2107_v25 = vpop.f32.mrf.mxu0  ;;  %v2361_v12 = vpop.f32.mrf.mxu1 }
 0x213   :  { %v5291_v20 = vadd.f32 %v2107_v25, %v1812_v61  ;;  %v2448_v5 = vadd.f32 %v2361_v12, %v5232_v29 }
 0x214   :  { %v3774_v53 = vpop.f32.mrf.mxu0  ;;  %v3794_v15 = vpop.f32.mrf.mxu1 }
 0x216   :  { %v2110_v14 = vpop.f32.mrf.mxu0  ;;  %v2364_v52 = vpop.f32.mrf.mxu1 }
 0x217   :  { %v5293_v6 = vadd.f32 %v2110_v14, %v1813_v43  ;;  %v2449_v60 = vadd.f32 %v2364_v52, %v5235_v45 }
 0x218   :  { %v3775_v51 = vpop.f32.mrf.mxu0  ;;  %v3795_v47 = vpop.f32.mrf.mxu1 }
 0x21a   :  { %v2369_v48 = vpop.f32.mrf.mxu1  ;;  %v2684_v16 = vpop.f32.mrf.mxu0 }
 0x21b   :  { %v2771_v18 = vadd.f32 %v2684_v16, %v2448_v5  ;;  %v2450_v49 = vadd.f32 %v2369_v48, %v5238_v24 }
 0x21c   :  { %v3798_v40 = vpop.f32.mrf.mxu1  ;;  %v3854_v46 = vpop.f32.mrf.mxu0 }
 0x21d   :  { %v2800_v1 = vadd.f32 %v5300_v3, %v2771_v18 }
 0x21e   :  { %v2372_v62 = vpop.f32.mrf.mxu1  ;;  %v2687_v63 = vpop.f32.mrf.mxu0 }
 0x21f   :  { %v2772_v34 = vadd.f32 %v2687_v63, %v2449_v60  ;;  %v2451_v28 = vadd.f32 %v2372_v62, %v5241_v54 }
 0x220   :  { %v3799_v17 = vpop.f32.mrf.mxu1  ;;  %v3855_v36 = vpop.f32.mrf.mxu0 }
 0x221   :  { %v2801_v31 = vadd.f32 %v5300_v3, %v2772_v34 }
 0x222   :  { %v2377_v29 = vpop.f32.mrf.mxu1  ;;  %v2692_v21 = vpop.f32.mrf.mxu0 }
 0x223   :  { %v3123_v45 = vpack.c.bf16 %v2801_v31, %v2800_v1  ;;  %v2773_v57 = vadd.f32 %v2692_v21, %v2450_v49  ;;  %v2452_v35 = vadd.f32 %v2377_v29, %v5244_v4 }
 0x224   :  { %v3802_v56 = vpop.f32.mrf.mxu1  ;;  %v3858_v44 = vpop.f32.mrf.mxu0 }
 0x225   :  { %3124 = vst [vmem:[%s5380_s3] sm:$0xff] %v3123_v45   ;;  %v2802_v61 = vadd.f32 %v5300_v3, %v2773_v57 }
 0x226   :  { %v2380_v33 = vpop.f32.mrf.mxu1  ;;  %v2695_v32 = vpop.f32.mrf.mxu0 }
 0x227   :  { %v2774_v30 = vadd.f32 %v2695_v32, %v2451_v28  ;;  %v2453_v0 = vadd.f32 %v2380_v33, %v5247_v37 }
 0x228   :  { %v3803_v19 = vpop.f32.mrf.mxu1  ;;  %v3859_v59 = vpop.f32.mrf.mxu0 }
 0x229   :  { %v2803_v58 = vadd.f32 %v5300_v3, %v2774_v30 }
 0x22a   :  { %v2385_v24 = vpop.f32.mrf.mxu1  ;;  %v2700_v55 = vpop.f32.mrf.mxu0 }
 0x22b   :  { %v3128_v8 = vpack.c.bf16 %v2803_v58, %v2802_v61  ;;  %v2775_v2 = vadd.f32 %v2700_v55, %v2452_v35  ;;  %v2454_v48 = vadd.f32 %v2385_v24, %v5250_v27 }
 0x22c   :  { %v3806_v54 = vpop.f32.mrf.mxu1  ;;  %v3862_v43 = vpop.f32.mrf.mxu0 }
 0x22d   :  { %3175 = vst [vmem:[%s5380_s3 + $0x8] sm:$0xff] %v3128_v8   ;;  %v2804_v52 = vadd.f32 %v5300_v3, %v2775_v2 }
 0x22e   :  { %v2388_v25 = vpop.f32.mrf.mxu1  ;;  %v2703_v12 = vpop.f32.mrf.mxu0 }
 0x22f   :  { %v2776_v53 = vadd.f32 %v2703_v12, %v2453_v0  ;;  %v2455_v40 = vadd.f32 %v2388_v25, %v5253_v9 }
 0x230   :  { %v3807_v15 = vpop.f32.mrf.mxu1  ;;  %v3863_v14 = vpop.f32.mrf.mxu0 }
 0x231   :  { %v2805_v51 = vadd.f32 %v5300_v3, %v2776_v53 }
 0x232   :  { %v2393_v4 = vpop.f32.mrf.mxu1  ;;  %v2708_v47 = vpop.f32.mrf.mxu0 }
 0x233   :  { %v3133_v16 = vpack.c.bf16 %v2805_v51, %v2804_v52  ;;  %v2777_v46 = vadd.f32 %v2708_v47, %v2454_v48  ;;  %v2456_v31 = vadd.f32 %v2393_v4, %v5256_v10 }
 0x234   :  { %v3810_v37 = vpop.f32.mrf.mxu1  ;;  %v3866_v5 = vpop.f32.mrf.mxu0 }
 0x235   :  { %3176 = vst [vmem:[%s5380_s3 + $0x10] sm:$0xff] %v3133_v16   ;;  %v2806_v17 = vadd.f32 %v5300_v3, %v2777_v46 }
 0x236   :  { %v2396_v60 = vpop.f32.mrf.mxu1  ;;  %v2711_v18 = vpop.f32.mrf.mxu0 }
 0x237   :  { %v2778_v62 = vadd.f32 %v2711_v18, %v2455_v40  ;;  %v2457_v49 = vadd.f32 %v2396_v60, %v5259_v26 }
 0x238   :  { %v3811_v63 = vpop.f32.mrf.mxu1  ;;  %v3867_v34 = vpop.f32.mrf.mxu0 }
 0x239   :  { %v2807_v36 = vadd.f32 %v5300_v3, %v2778_v62 }
 0x23a   :  { %v2401_v27 = vpop.f32.mrf.mxu1  ;;  %v2716_v1 = vpop.f32.mrf.mxu0 }
 0x23b   :  { %v3138_v29 = vpack.c.bf16 %v2807_v36, %v2806_v17  ;;  %v2779_v45 = vadd.f32 %v2716_v1, %v2456_v31  ;;  %v2458_v59 = vadd.f32 %v2401_v27, %v5262_v23 }
 0x23c   :  { %v3814_v9 = vpop.f32.mrf.mxu1  ;;  %v3870_v21 = vpop.f32.mrf.mxu0 }
 0x23d   :  { %3177 = vst [vmem:[%s5380_s3 + $0x18] sm:$0xff] %v3138_v29   ;;  %v2808_v32 = vadd.f32 %v5300_v3, %v2779_v45 }
 0x23e   :  { %v2404_v56 = vpop.f32.mrf.mxu1  ;;  %v2719_v44 = vpop.f32.mrf.mxu0 }
 0x23f   :  { %v2780_v28 = vadd.f32 %v2719_v44, %v2457_v49  ;;  %v2459_v24 = vadd.f32 %v2404_v56, %v5265_v7 }
 0x240   :  { %v3815_v57 = vpop.f32.mrf.mxu1  ;;  %v3871_v33 = vpop.f32.mrf.mxu0 }
 0x241   :  { %v2809_v30 = vadd.f32 %v5300_v3, %v2780_v28 }
 0x242   :  { %v2409_v10 = vpop.f32.mrf.mxu1  ;;  %v2724_v19 = vpop.f32.mrf.mxu0 }
 0x243   :  { %v3143_v61 = vpack.c.bf16 %v2809_v30, %v2808_v32  ;;  %v2781_v55 = vadd.f32 %v2724_v19, %v2458_v59  ;;  %v2460_v53 = vadd.f32 %v2409_v10, %v5268_v50 }
 0x244   :  { %v3818_v26 = vpop.f32.mrf.mxu1  ;;  %v3874_v58 = vpop.f32.mrf.mxu0 }
 0x245   :  { %3178 = vst [vmem:[%s5380_s3 + $0x20] sm:$0xff] %v3143_v61   ;;  %v2810_v2 = vadd.f32 %v5300_v3, %v2781_v55 }
 0x246   :  { %v2412_v35 = vpop.f32.mrf.mxu1  ;;  %v2727_v8 = vpop.f32.mrf.mxu0 }
 0x247   :  { %v2782_v54 = vadd.f32 %v2727_v8, %v2459_v24  ;;  %v2461_v52 = vadd.f32 %v2412_v35, %v5271_v42 }
 0x248   :  { %v3819_v43 = vpop.f32.mrf.mxu1  ;;  %v3875_v0 = vpop.f32.mrf.mxu0 }
 0x249   :  { %v2811_v25 = vadd.f32 %v5300_v3, %v2782_v54 }
 0x24a   :  { %v2417_v23 = vpop.f32.mrf.mxu1  ;;  %v2732_v12 = vpop.f32.mrf.mxu0 }
 0x24b   :  { %v3148_v15 = vpack.c.bf16 %v2811_v25, %v2810_v2  ;;  %v2783_v51 = vadd.f32 %v2732_v12, %v2460_v53  ;;  %v2462_v60 = vadd.f32 %v2417_v23, %v5274_v11 }
 0x24c   :  { %v3822_v7 = vpop.f32.mrf.mxu1  ;;  %v3878_v14 = vpop.f32.mrf.mxu0 }
 0x24d   :  { %3179 = vst [vmem:[%s5380_s3 + $0x28] sm:$0xff] %v3148_v15   ;;  %v2812_v5 = vadd.f32 %v5300_v3, %v2783_v51 }
 0x24e   :  { %v2420_v4 = vpop.f32.mrf.mxu1  ;;  %v2735_v47 = vpop.f32.mrf.mxu0 }
 0x24f   :  { %v2784_v48 = vadd.f32 %v2735_v47, %v2461_v52  ;;  %v2463_v63 = vadd.f32 %v2420_v4, %v5277_v13 }
 0x250   :  { %v3823_v16 = vpop.f32.mrf.mxu1  ;;  %v3879_v37 = vpop.f32.mrf.mxu0 }
 0x251   :  { %v2813_v40 = vadd.f32 %v5300_v3, %v2784_v48 }
 0x252   :  { %v2425_v50 = vpop.f32.mrf.mxu1  ;;  %v2740_v46 = vpop.f32.mrf.mxu0 }
 0x253   :  { %v3153_v18 = vpack.c.bf16 %v2813_v40, %v2812_v5  ;;  %v2785_v34 = vadd.f32 %v2740_v46, %v2462_v60  ;;  %v2464_v49 = vadd.f32 %v2425_v50, %v5280_v38 }
 0x254   :  { %v3826_v42 = vpop.f32.mrf.mxu1  ;;  %v3882_v62 = vpop.f32.mrf.mxu0 }
 0x255   :  { %3180 = vst [vmem:[%s5380_s3 + $0x30] sm:$0xff] %v3153_v18   ;;  %v2814_v29 = vadd.f32 %v5300_v3, %v2785_v34 }
 0x256   :  { %v2428_v17 = vpop.f32.mrf.mxu1  ;;  %v2743_v36 = vpop.f32.mrf.mxu0 }
 0x257   :  { %v2786_v27 = vadd.f32 %v2743_v36, %v2463_v63  ;;  %v2465_v44 = vadd.f32 %v2428_v17, %v5283_v39 }
 0x258   :  { %v3827_v1 = vpop.f32.mrf.mxu1  ;;  %v3883_v31 = vpop.f32.mrf.mxu0 }
 0x259   :  { %v2815_v9 = vadd.f32 %v5300_v3, %v2786_v27 }
 0x25a   :  { %v2433_v11 = vpop.f32.mrf.mxu1  ;;  %v2748_v21 = vpop.f32.mrf.mxu0 }
 0x25b   :  { %v3158_v45 = vpack.c.bf16 %v2815_v9, %v2814_v29  ;;  %v2787_v28 = vadd.f32 %v2748_v21, %v2464_v49  ;;  %v2466_v26 = vadd.f32 %v2433_v11, %v5286_v41 }
 0x25c   :  { %v3830_v13 = vpop.f32.mrf.mxu1  ;;  %v3886_v56 = vpop.f32.mrf.mxu0 }
 0x25d   :  { %3181 = vst [vmem:[%s5380_s3 + $0x38] sm:$0xff] %v3158_v45   ;;  %v2816_v19 = vadd.f32 %v5300_v3, %v2787_v28 }
 0x25e   :  { %v2436_v57 = vpop.f32.mrf.mxu1  ;;  %v2751_v33 = vpop.f32.mrf.mxu0 }
 0x25f   :  { %v2788_v32 = vadd.f32 %v2751_v33, %v2465_v44  ;;  %v2467_v55 = vadd.f32 %v2436_v57, %v5289_v22 }
 0x260   :  { %v3831_v30 = vpop.f32.mrf.mxu1  ;;  %v3887_v10 = vpop.f32.mrf.mxu0 }
 0x261   :  { %v2817_v59 = vadd.f32 %v5300_v3, %v2788_v32 }
 0x262   :  { %v2441_v38 = vpop.f32.mrf.mxu1  ;;  %v2756_v61 = vpop.f32.mrf.mxu0 }
 0x263   :  { %v3163_v58 = vpack.c.bf16 %v2817_v59, %v2816_v19  ;;  %v2789_v35 = vadd.f32 %v2756_v61, %v2466_v26  ;;  %v2468_v12 = vadd.f32 %v2441_v38, %v5291_v20 }
 0x264   :  { %v3834_v39 = vpop.f32.mrf.mxu1  ;;  %v3890_v24 = vpop.f32.mrf.mxu0 }
 0x265   :  { %3182 = vst [vmem:[%s5380_s3 + $0x40] sm:$0xff] %v3163_v58   ;;  %v2818_v25 = vadd.f32 %v5300_v3, %v2789_v35 }
 0x266   :  { %v2444_v8 = vpop.f32.mrf.mxu1  ;;  %v2759_v54 = vpop.f32.mrf.mxu0 }
 0x267   :  { %v2790_v43 = vadd.f32 %v2759_v54, %v2467_v55  ;;  %v2469_v22 = vadd.f32 %v2444_v8, %v5293_v6 }
 0x268   :  { %v3891_v0 = vpop.f32.mrf.mxu0  ;;  %v3835_v2 = vpop.f32.mrf.mxu1 }
 0x269   :  { %v2819_v23 = vadd.f32 %v5300_v3, %v2790_v43 }
 0x26a   :  { %v2764_v41 = vpop.f32.mrf.mxu0 }
 0x26b   :  { %v3168_v53 = vpack.c.bf16 %v2819_v23, %v2818_v25  ;;  %v2791_v7 = vadd.f32 %v2764_v41, %v2468_v12 }
 0x26c   :  { %v3894_v15 = vpop.f32.mrf.mxu0 }
 0x26d   :  { %3183 = vst [vmem:[%s5380_s3 + $0x48] sm:$0xff] %v3168_v53   ;;  %v2820_v4 = vadd.f32 %v5300_v3, %v2791_v7 }
 0x26e   :  { %v2767_v14 = vpop.f32.mrf.mxu0 }
 0x26f   :  { %v2792_v52 = vadd.f32 %v2767_v14, %v2469_v22 }
 0x270   :  { %v3895_v51 = vpop.f32.mrf.mxu0 }
 0x271   :  { %v2821_v47 = vadd.f32 %v5300_v3, %v2792_v52 }
 0x273   :  { %v3173_v48 = vpack.c.bf16 %v2821_v47, %v2820_v4 }
 0x275   :  { %3184 = vst [vmem:[%s5380_s3 + $0x50] sm:$0xff] %v3173_v48  }

</bundles_post_ra>
